<compile_context>
chip_gen: v5e
topology: v5e:2x2
jax: 0.10.0
libtpu: 0.0.40
codegen_flags: <defaults>
</compile_context>

<pallas_src>
import functools

import jax
import jax.numpy as jnp
import numpy as np
from jax.experimental import pallas as pl
from jax.experimental.pallas import tpu as pltpu


# ------------------------------- kernel ------------------------------------ #

def _head_fused_kernel(patch_ref, w1_ref, t1_ref, w2_ref, t2_ref, w3_ref, b3_ref,
                       o_ref, *, W):
    # patch_ref: [M, 9*Cin] bf16 im2col rows, row = (img_in_block, i, j)
    # stage 1: 3x3 conv (one MXU pass, BN scale pre-folded into w1) + shift + ReLU
    y1 = jnp.dot(patch_ref[...], w1_ref[...],
                 preferred_element_type=jnp.float32)           # [M, Cmid]
    y1 = jnp.maximum(y1 + t1_ref[...], 0.0)

    # stage 2: ConvT(k2,s2), 2x2 taps concatenated along columns (a,b,cout);
    # BN scale folded into w2, bias+shift folded into t2.
    y2 = jnp.dot(y1.astype(jnp.bfloat16), w2_ref[...],
                 preferred_element_type=jnp.float32)           # [M, 4*Cmid]
    y2 = jnp.maximum(y2 + t2_ref[...], 0.0)

    # stage 3: ConvT(k2,s2) -> 1 channel via block-diagonal tap weight + sigmoid
    z = jnp.dot(y2.astype(jnp.bfloat16), w3_ref[...],
                preferred_element_type=jnp.float32)            # [M, 16] cols=(a,b,c,d)
    z = jax.nn.sigmoid(z + b3_ref[...])

    # lane-dense layout: (img*H + i) rows, (j, a, b, c, d) columns -> W*16 lanes
    rows = z.shape[0] // W
    z3 = z.reshape(rows, W, 16)                                # leading-dim split (free)
    zl = jnp.concatenate([z3[:, j, :] for j in range(W)], axis=-1)   # [rows, W*16]
    o_ref[...] = zl.astype(o_ref.dtype)


# ------------------------------ wrapper ------------------------------------ #

def head_forward(x_nchw, p):
    """Eval-mode Head.forward: sigmoid(b(x)).  x_nchw: [N, filters[3], H, W] -> [N, 1, 4H, 4W]."""
    N, Cin, H, W = x_nchw.shape
    Cmid = p["w1"].shape[-1]

    # --- im2col in the wrapper, bf16 (halves input DMA, removes in-kernel relayouts)
    x = jnp.transpose(x_nchw, (0, 2, 3, 1)).astype(jnp.bfloat16)       # NCHW -> NHWC
    xp = jnp.pad(x, ((0, 0), (1, 1), (1, 1), (0, 0)))                  # 1-px halo
    patch = jnp.concatenate(
        [xp[:, dy:dy + H, dx:dx + W, :] for dy in range(3) for dx in range(3)],
        axis=-1)                                                       # [N, H, W, 9*Cin]
    patch = patch.reshape(N * H * W, 9 * Cin)                          # rows = (n, i, j)

    # --- batch several images per grid step (target ~256 rows per matmul)
    BIMG = max(1, min(N, max(1, 256 // (H * W))))
    NB = pl.cdiv(N, BIMG)
    N_pad = NB * BIMG
    if N_pad != N:
        patch = jnp.pad(patch, ((0, (N_pad - N) * H * W), (0, 0)))
    M = BIMG * H * W

    # --- stage 1 weights: [3,3,Cin,Cmid] -> [9*Cin, Cmid], BN scale folded in
    w1 = (p["w1"].reshape(9 * Cin, Cmid) * p["scale1"][None, :]).astype(jnp.bfloat16)
    t1 = p["shift1"].reshape(1, Cmid).astype(jnp.float32)

    # --- stage 2: 2x2 taps along output columns (a, b, cout); BN scale folded
    #     into the weight, conv-transpose bias folded into the shift.
    s2t = jnp.tile(p["scale2"], 4)
    w2 = (jnp.transpose(p["w2"], (2, 0, 1, 3)).reshape(Cmid, 4 * Cmid)
          * s2t[None, :]).astype(jnp.bfloat16)
    t2 = jnp.tile(p["b2"] * p["scale2"] + p["shift2"], 4).reshape(1, 4 * Cmid).astype(jnp.float32)

    # --- stage 3: block-diagonal tap weight, rows (a,b,k) -> cols (a,b,c,d)
    w3_tap = jnp.transpose(p["w3"][..., 0], (2, 0, 1)).reshape(Cmid, 4)       # [k, (c,d)]
    w3 = jnp.kron(jnp.eye(4, dtype=jnp.float32), w3_tap).astype(jnp.bfloat16)  # [4*Cmid, 16]
    b3 = jnp.tile(p["b3"], 16).reshape(1, 16).astype(jnp.float32)

    kernel = functools.partial(_head_fused_kernel, W=W)
    zl = pl.pallas_call(
        kernel,
        out_shape=jax.ShapeDtypeStruct((N_pad * H, W * 16), jnp.float32),
        grid=(NB,),
        in_specs=[
            pl.BlockSpec((M, 9 * Cin), lambda n: (n, 0)),
            pl.BlockSpec((9 * Cin, Cmid), lambda n: (0, 0)),
            pl.BlockSpec((1, Cmid), lambda n: (0, 0)),
            pl.BlockSpec((Cmid, 4 * Cmid), lambda n: (0, 0)),
            pl.BlockSpec((1, 4 * Cmid), lambda n: (0, 0)),
            pl.BlockSpec((4 * Cmid, 16), lambda n: (0, 0)),
            pl.BlockSpec((1, 16), lambda n: (0, 0)),
        ],
        out_specs=pl.BlockSpec((BIMG * H, W * 16), lambda n: (n, 0)),
        compiler_params=pltpu.CompilerParams(dimension_semantics=("parallel",)),
    )(patch, w1, t1, w2, t2, w3, b3)

    # pixel shuffle: row=(n,i), col=(j,a,b,c,d) -> out[n, 4i+2a+c, 4j+2b+d];
    # C=1 so the NHWC->NCHW step is a pure reshape (no transpose).
    z = zl.reshape(N_pad, H, W, 2, 2, 2, 2)
    z = jnp.transpose(z, (0, 1, 3, 5, 2, 4, 6))
    z = z.reshape(N_pad, 1, 4 * H, 4 * W)
    return z[:N]


# ------------------------------ reference ---------------------------------- #

def _deconv_ref(x, w, bias):
    N, H, W, Cin = x.shape
    Cout = w.shape[-1]
    t = jnp.einsum('nhwi,abio->nhawbo', x, w)            # [N, H, 2, W, 2, Cout]
    return t.reshape(N, 2 * H, 2 * W, Cout) + bias


def head_ref(x_nchw, p):
    x = jnp.transpose(x_nchw, (0, 2, 3, 1)).astype(jnp.float32)
    y = jax.lax.conv_general_dilated(
        x, p["w1"], window_strides=(1, 1), padding="SAME",
        dimension_numbers=("NHWC", "HWIO", "NHWC"))
    y = jnp.maximum(y * p["scale1"] + p["shift1"], 0.0)
    y = _deconv_ref(y, p["w2"], p["b2"])
    y = jnp.maximum(y * p["scale2"] + p["shift2"], 0.0)
    y = _deconv_ref(y, p["w3"], p["b3"])
    y = jax.nn.sigmoid(y)
    return jnp.transpose(y, (0, 3, 1, 2))


# -------------------------------- setup ------------------------------------ #

def fold_bn(gamma, beta, mean, var, eps=1e-5):
    scale = gamma / jnp.sqrt(var + eps)
    shift = beta - mean * scale
    return scale, shift


def init_params(key, c_in, c_mid):
    ks = jax.random.split(key, 12)
    # Conv2d(filters[3] -> filters[1], k=3, p=1, bias=False) + BN
    w1 = 0.1 * jax.random.normal(ks[0], (3, 3, c_in, c_mid), jnp.float32)
    g1 = jax.random.uniform(ks[1], (c_mid,), jnp.float32, 0.5, 1.5)
    b1 = 0.1 * jax.random.normal(ks[2], (c_mid,), jnp.float32)
    m1 = 0.1 * jax.random.normal(ks[3], (c_mid,), jnp.float32)
    v1 = jax.random.uniform(ks[4], (c_mid,), jnp.float32, 0.5, 1.5)
    scale1, shift1 = fold_bn(g1, b1, m1, v1)
    # ConvTranspose2d(c_mid -> c_mid, k=2, s=2, bias=True) + BN
    w2 = 0.1 * jax.random.normal(ks[5], (2, 2, c_mid, c_mid), jnp.float32)
    bb2 = 0.1 * jax.random.normal(ks[6], (c_mid,), jnp.float32)
    g2 = jax.random.uniform(ks[7], (c_mid,), jnp.float32, 0.5, 1.5)
    b2 = 0.1 * jax.random.normal(ks[8], (c_mid,), jnp.float32)
    m2 = 0.1 * jax.random.normal(ks[9], (c_mid,), jnp.float32)
    v2 = jax.random.uniform(ks[10], (c_mid,), jnp.float32, 0.5, 1.5)
    scale2, shift2 = fold_bn(g2, b2, m2, v2)
    # ConvTranspose2d(c_mid -> 1, k=2, s=2, bias=True)
    w3 = 0.1 * jax.random.normal(ks[11], (2, 2, c_mid, 1), jnp.float32)
    b3 = jnp.array([0.05], jnp.float32)
    return dict(w1=w1, scale1=scale1, shift1=shift1,
                w2=w2, b2=bb2, scale2=scale2, shift2=shift2,
                w3=w3, b3=b3)


if __name__ == "__main__":
    # filters = (4, 16, 24, 32): Head uses filters[3]=32 (input ch), filters[1]=16 (mid ch)
    C_IN, C_MID = 32, 16
    N, H, W = 2, 8, 8

    key = jax.random.PRNGKey(0)
    k_x, k_p = jax.random.split(key)
    x = jax.random.normal(k_x, (N, C_IN, H, W), jnp.float32)   # NCHW, like PyTorch
    params = init_params(k_p, C_IN, C_MID)

    head_fn = jax.jit(head_forward)
    out = jax.block_until_ready(head_fn(x, params))            # [N, 1, 4H, 4W]
    ref = jax.block_until_ready(head_ref(x, params))

    assert out.shape == (N, 1, 4 * H, 4 * W), out.shape
    np.testing.assert_allclose(np.asarray(out), np.asarray(ref), atol=2e-2, rtol=2e-2)
    print("KERNEL_OK")
</pallas_src>

<mosaic_0001>
module attributes {stable_mosaic.version = 11 : i64} {
  func.func @_head_fused_kernel(%arg0: i32, %arg1: memref<128x288xbf16, #tpu.memory_space<vmem>>, %arg2: memref<288x16xbf16, #tpu.memory_space<vmem>>, %arg3: memref<1x16xf32, #tpu.memory_space<vmem>>, %arg4: memref<16x64xbf16, #tpu.memory_space<vmem>>, %arg5: memref<1x64xf32, #tpu.memory_space<vmem>>, %arg6: memref<64x16xbf16, #tpu.memory_space<vmem>>, %arg7: memref<1x16xf32, #tpu.memory_space<vmem>>, %arg8: memref<16x128xf32, #tpu.memory_space<vmem>>) attributes {dimension_semantics = [#tpu.dimension_semantics<parallel>], iteration_bounds = array<i64: 1>, scalar_prefetch = 0 : i64, scratch_operands = 0 : i64, tpu.core_type = #tpu.core_type<tc>, window_params = [{transform_indices = @transform_0, window_bounds = array<i64: 128, 288>}, {pipeline_mode = #tpu.pipeline_mode<synchronous>, transform_indices = @transform_1, window_bounds = array<i64: 288, 16>}, {pipeline_mode = #tpu.pipeline_mode<synchronous>, transform_indices = @transform_2, window_bounds = array<i64: 1, 16>}, {pipeline_mode = #tpu.pipeline_mode<synchronous>, transform_indices = @transform_3, window_bounds = array<i64: 16, 64>}, {pipeline_mode = #tpu.pipeline_mode<synchronous>, transform_indices = @transform_4, window_bounds = array<i64: 1, 64>}, {pipeline_mode = #tpu.pipeline_mode<synchronous>, transform_indices = @transform_5, window_bounds = array<i64: 64, 16>}, {pipeline_mode = #tpu.pipeline_mode<synchronous>, transform_indices = @transform_6, window_bounds = array<i64: 1, 16>}, {transform_indices = @transform_7, window_bounds = array<i64: 16, 128>}]} {
    %c0 = arith.constant 0 : index
    %c0_0 = arith.constant 0 : index
    %0 = vector.load %arg1[%c0, %c0_0] : memref<128x288xbf16, #tpu.memory_space<vmem>>, vector<128x288xbf16>
    %c0_1 = arith.constant 0 : index
    %c0_2 = arith.constant 0 : index
    %1 = vector.load %arg2[%c0_1, %c0_2] : memref<288x16xbf16, #tpu.memory_space<vmem>>, vector<288x16xbf16>
    %cst = arith.constant dense<0.000000e+00> : vector<128x16xf32>
    %2 = tpu.matmul %0, %1, %cst {dimension_numbers = #tpu.dot_dimension_numbers<[1], [0], [0], [1], [0, 0, 1, 1], [], []>} : vector<128x288xbf16>, vector<288x16xbf16>, vector<128x16xf32> -> vector<128x16xf32>
    %c0_3 = arith.constant 0 : index
    %c0_4 = arith.constant 0 : index
    %3 = vector.load %arg3[%c0_3, %c0_4] : memref<1x16xf32, #tpu.memory_space<vmem>>, vector<1x16xf32>
    %4 = vector.broadcast %3 : vector<1x16xf32> to vector<128x16xf32>
    %5 = arith.addf %2, %4 : vector<128x16xf32>
    %cst_5 = arith.constant 0.000000e+00 : f32
    %6 = vector.broadcast %cst_5 : f32 to vector<128x16xf32>
    %7 = arith.maximumf %5, %6 : vector<128x16xf32>
    %8 = arith.truncf %7 : vector<128x16xf32> to vector<128x16xbf16>
    %c0_6 = arith.constant 0 : index
    %c0_7 = arith.constant 0 : index
    %9 = vector.load %arg4[%c0_6, %c0_7] : memref<16x64xbf16, #tpu.memory_space<vmem>>, vector<16x64xbf16>
    %cst_8 = arith.constant dense<0.000000e+00> : vector<128x64xf32>
    %10 = tpu.matmul %8, %9, %cst_8 {dimension_numbers = #tpu.dot_dimension_numbers<[1], [0], [0], [1], [0, 0, 1, 1], [], []>} : vector<128x16xbf16>, vector<16x64xbf16>, vector<128x64xf32> -> vector<128x64xf32>
    %c0_9 = arith.constant 0 : index
    %c0_10 = arith.constant 0 : index
    %11 = vector.load %arg5[%c0_9, %c0_10] : memref<1x64xf32, #tpu.memory_space<vmem>>, vector<1x64xf32>
    %12 = vector.broadcast %11 : vector<1x64xf32> to vector<128x64xf32>
    %13 = arith.addf %10, %12 : vector<128x64xf32>
    %cst_11 = arith.constant 0.000000e+00 : f32
    %14 = vector.broadcast %cst_11 : f32 to vector<128x64xf32>
    %15 = arith.maximumf %13, %14 : vector<128x64xf32>
    %16 = arith.truncf %15 : vector<128x64xf32> to vector<128x64xbf16>
    %c0_12 = arith.constant 0 : index
    %c0_13 = arith.constant 0 : index
    %17 = vector.load %arg6[%c0_12, %c0_13] : memref<64x16xbf16, #tpu.memory_space<vmem>>, vector<64x16xbf16>
    %cst_14 = arith.constant dense<0.000000e+00> : vector<128x16xf32>
    %18 = tpu.matmul %16, %17, %cst_14 {dimension_numbers = #tpu.dot_dimension_numbers<[1], [0], [0], [1], [0, 0, 1, 1], [], []>} : vector<128x64xbf16>, vector<64x16xbf16>, vector<128x16xf32> -> vector<128x16xf32>
    %c0_15 = arith.constant 0 : index
    %c0_16 = arith.constant 0 : index
    %19 = vector.load %arg7[%c0_15, %c0_16] : memref<1x16xf32, #tpu.memory_space<vmem>>, vector<1x16xf32>
    %20 = vector.broadcast %19 : vector<1x16xf32> to vector<128x16xf32>
    %21 = arith.addf %18, %20 : vector<128x16xf32>
    %22 = arith.negf %21 : vector<128x16xf32>
    %23 = math.exp %22 : vector<128x16xf32>
    %cst_17 = arith.constant 1.000000e+00 : f32
    %24 = vector.broadcast %cst_17 : f32 to vector<128x16xf32>
    %25 = arith.addf %24, %23 : vector<128x16xf32>
    %26 = arith.divf %24, %25 : vector<128x16xf32>
    %27 = vector.shape_cast %26 : vector<128x16xf32> to vector<16x8x16xf32>
    %28 = vector.extract_strided_slice %27 {offsets = [0, 0, 0], sizes = [16, 1, 16], strides = [1, 1, 1]} : vector<16x8x16xf32> to vector<16x1x16xf32>
    %29 = vector.shape_cast %28 : vector<16x1x16xf32> to vector<16x16xf32>
    %30 = vector.extract_strided_slice %27 {offsets = [0, 1, 0], sizes = [16, 1, 16], strides = [1, 1, 1]} : vector<16x8x16xf32> to vector<16x1x16xf32>
    %31 = vector.shape_cast %30 : vector<16x1x16xf32> to vector<16x16xf32>
    %32 = vector.extract_strided_slice %27 {offsets = [0, 2, 0], sizes = [16, 1, 16], strides = [1, 1, 1]} : vector<16x8x16xf32> to vector<16x1x16xf32>
    %33 = vector.shape_cast %32 : vector<16x1x16xf32> to vector<16x16xf32>
    %34 = vector.extract_strided_slice %27 {offsets = [0, 3, 0], sizes = [16, 1, 16], strides = [1, 1, 1]} : vector<16x8x16xf32> to vector<16x1x16xf32>
    %35 = vector.shape_cast %34 : vector<16x1x16xf32> to vector<16x16xf32>
    %36 = vector.extract_strided_slice %27 {offsets = [0, 4, 0], sizes = [16, 1, 16], strides = [1, 1, 1]} : vector<16x8x16xf32> to vector<16x1x16xf32>
    %37 = vector.shape_cast %36 : vector<16x1x16xf32> to vector<16x16xf32>
    %38 = vector.extract_strided_slice %27 {offsets = [0, 5, 0], sizes = [16, 1, 16], strides = [1, 1, 1]} : vector<16x8x16xf32> to vector<16x1x16xf32>
    %39 = vector.shape_cast %38 : vector<16x1x16xf32> to vector<16x16xf32>
    %40 = vector.extract_strided_slice %27 {offsets = [0, 6, 0], sizes = [16, 1, 16], strides = [1, 1, 1]} : vector<16x8x16xf32> to vector<16x1x16xf32>
    %41 = vector.shape_cast %40 : vector<16x1x16xf32> to vector<16x16xf32>
    %42 = vector.extract_strided_slice %27 {offsets = [0, 7, 0], sizes = [16, 1, 16], strides = [1, 1, 1]} : vector<16x8x16xf32> to vector<16x1x16xf32>
    %43 = vector.shape_cast %42 : vector<16x1x16xf32> to vector<16x16xf32>
    %44 = tpu.concatenate %29, %31, %33, %35, %37, %39, %41, %43 in 1 : vector<16x16xf32>, vector<16x16xf32>, vector<16x16xf32>, vector<16x16xf32>, vector<16x16xf32>, vector<16x16xf32>, vector<16x16xf32>, vector<16x16xf32> -> vector<16x128xf32>
    %c0_18 = arith.constant 0 : index
    %c0_19 = arith.constant 0 : index
    %45 = vector.load %arg8[%c0_18, %c0_19] : memref<16x128xf32, #tpu.memory_space<vmem>>, vector<16x128xf32>
    tpu.vector_store %arg8[%c0_18, %c0_19], %44 {strides = array<i32>} : memref<16x128xf32, #tpu.memory_space<vmem>>, vector<16x128xf32>,
    return
  }
  func.func @transform_0(%arg0: i32) -> (i32, i32) {
    %c0_i32 = arith.constant 0 : i32
    %c0_i32_0 = arith.constant 0 : i32
    return %arg0, %c0_i32 : i32, i32
  }
  func.func @transform_1(%arg0: i32) -> (i32, i32) {
    %c0_i32 = arith.constant 0 : i32
    %c0_i32_0 = arith.constant 0 : i32
    %c0_i32_1 = arith.constant 0 : i32
    return %c0_i32, %c0_i32_0 : i32, i32
  }
  func.func @transform_2(%arg0: i32) -> (i32, i32) {
    %c0_i32 = arith.constant 0 : i32
    %c0_i32_0 = arith.constant 0 : i32
    %c0_i32_1 = arith.constant 0 : i32
    return %c0_i32, %c0_i32_0 : i32, i32
  }
  func.func @transform_3(%arg0: i32) -> (i32, i32) {
    %c0_i32 = arith.constant 0 : i32
    %c0_i32_0 = arith.constant 0 : i32
    %c0_i32_1 = arith.constant 0 : i32
    return %c0_i32, %c0_i32_0 : i32, i32
  }
  func.func @transform_4(%arg0: i32) -> (i32, i32) {
    %c0_i32 = arith.constant 0 : i32
    %c0_i32_0 = arith.constant 0 : i32
    %c0_i32_1 = arith.constant 0 : i32
    return %c0_i32, %c0_i32_0 : i32, i32
  }
  func.func @transform_5(%arg0: i32) -> (i32, i32) {
    %c0_i32 = arith.constant 0 : i32
    %c0_i32_0 = arith.constant 0 : i32
    %c0_i32_1 = arith.constant 0 : i32
    return %c0_i32, %c0_i32_0 : i32, i32
  }
  func.func @transform_6(%arg0: i32) -> (i32, i32) {
    %c0_i32 = arith.constant 0 : i32
    %c0_i32_0 = arith.constant 0 : i32
    %c0_i32_1 = arith.constant 0 : i32
    return %c0_i32, %c0_i32_0 : i32, i32
  }
  func.func @transform_7(%arg0: i32) -> (i32, i32) {
    %c0_i32 = arith.constant 0 : i32
    %c0_i32_0 = arith.constant 0 : i32
    return %arg0, %c0_i32 : i32, i32
  }
}

</mosaic_0001>

<bundles_post_ra>
// kernel: tile.24
= control target key start
LH: loop header
LB: loop body
LE: loop exit
PB: predicated region body
PF: predicated region fallthrough
CT: control target
= control target key end

     0   :  { %s37_s8 = smov 16   ;;  %s38_s9 = smov 32   ;;  %vm7_vm0 = vcmask 130048   ;;  %vm13_vm1 = vcmask 523648   ;;  %vm19_vm2 = vcmask 392448   ;;  %vm25_vm3 = vcmask 261248   ;;  %s55_s0 = inlined_call_operand.vmem [shape: f32[4,16], index: 0, kind: input, shape index: {}]   ;;  %s56_s1 = inlined_call_operand.vmem [shape: f32[1,64], index: 1, kind: output, shape index: {}]  }
   0x1   :  { %v4_v0 = vld [vmem:[%s55_s0] sm:$0xf]  ;;  %s36_s0 = smov 48  }
   0x2   :  { %5 = vst [vmem:[#allocation1] sm:$0xf] %v4_v0 }
   0x9   :  { %v10_v1 = vld [vmem:[#allocation1 + $0x3] sm:$0x1]   ;;  %v22_v2 = vld [vmem:[#allocation1 + $0x1] sm:$0x1]   ;;  %v16_v3 = vld [vmem:[#allocation1 + $0x2] sm:$0x1]  }
   0xa   :  { %11 = vrot.lane.b32.xlu0 %v10_v1, %s36_s0  ;;  %23 = vrot.lane.b32.xlu1 %v22_v2, %s37_s8  ;;  %v6_v4 = vld [vmem:[#allocation1] sm:$0x1]  }
   0xb   :  { %8 = vst.msk [vmem:[#allocation0] sm:$0x1] %vm7_vm0, %v6_v4  }
  0x12   :  { %17 = vrot.lane.b32.xlu0 %v16_v3, %s38_s9 }
  0x7c   :  { %v12_v5 = vpop.permute.xlu0 %11   ;;  %v24_v6 = vpop.permute.xlu1 %23  }
  0x7d   :  { %14 = vst.msk [vmem:[#allocation0] sm:$0x1] %vm13_vm1, %v12_v5  }
  0x84   :  { %v18_v7 = vpop.permute.xlu0 %17  }
  0x85   :  { %20 = vst.msk [vmem:[#allocation0] sm:$0x1] %vm19_vm2, %v18_v7  }
  0x86   :  { %26 = vst.msk [vmem:[#allocation0] sm:$0x1] %vm25_vm3, %v24_v6  }
  0x8d   :  { %v29_v8 = vld [vmem:[#allocation0] sm:$0x1] }
  0x8e   :  { %32 = vst [vmem:[%s56_s1] sm:$0x1] %v29_v8 }

// kernel: tile.23
= control target key start
LH: loop header
LB: loop body
LE: loop exit
PB: predicated region body
PF: predicated region fallthrough
CT: control target
= control target key end

     0   :  { %s22_s0 = inlined_call_operand.vmem [shape: f32[16], index: 0, kind: input, shape index: {}]   ;;  %s23_s1 = inlined_call_operand.vmem [shape: f32[4,16], index: 1, kind: output, shape index: {}]  }
   0x1   :  { %v4_v0 = vld [vmem:[%s22_s0] ss:$0 sm:$0xff] }
   0x2   :  { %5 = vst [vmem:[%s23_s1] sm:$0xf] %v4_v0 }

// kernel: mul.28
= control target key start
LH: loop header
LB: loop body
LE: loop exit
PB: predicated region body
PF: predicated region fallthrough
CT: control target
= control target key end

     0   :  { %s37_s8 = smov 16   ;;  %s38_s9 = smov 32   ;;  %vm7_vm0 = vcmask 130048   ;;  %vm13_vm1 = vcmask 523648   ;;  %vm19_vm2 = vcmask 392448   ;;  %vm25_vm3 = vcmask 261248   ;;  %s55_s0 = inlined_call_operand.vmem [shape: f32[4,16], index: 0, kind: input, shape index: {}]   ;;  %s56_s1 = inlined_call_operand.vmem [shape: f32[64], index: 1, kind: output, shape index: {}]  }
   0x1   :  { %v4_v0 = vld [vmem:[%s55_s0] sm:$0xf]  ;;  %s36_s0 = smov 48  }
   0x2   :  { %5 = vst [vmem:[#allocation1] sm:$0xf] %v4_v0 }
   0x9   :  { %v10_v1 = vld [vmem:[#allocation1 + $0x3] sm:$0x1]   ;;  %v22_v2 = vld [vmem:[#allocation1 + $0x1] sm:$0x1]   ;;  %v16_v3 = vld [vmem:[#allocation1 + $0x2] sm:$0x1]  }
   0xa   :  { %11 = vrot.lane.b32.xlu0 %v10_v1, %s36_s0  ;;  %23 = vrot.lane.b32.xlu1 %v22_v2, %s37_s8  ;;  %v6_v4 = vld [vmem:[#allocation1] sm:$0x1]  }
   0xb   :  { %8 = vst.msk [vmem:[#allocation0] sm:$0x1] %vm7_vm0, %v6_v4  }
  0x12   :  { %17 = vrot.lane.b32.xlu0 %v16_v3, %s38_s9 }
  0x7c   :  { %v12_v5 = vpop.permute.xlu0 %11   ;;  %v24_v6 = vpop.permute.xlu1 %23  }
  0x7d   :  { %14 = vst.msk [vmem:[#allocation0] sm:$0x1] %vm13_vm1, %v12_v5  }
  0x84   :  { %v18_v7 = vpop.permute.xlu0 %17  }
  0x85   :  { %20 = vst.msk [vmem:[#allocation0] sm:$0x1] %vm19_vm2, %v18_v7  }
  0x86   :  { %26 = vst.msk [vmem:[#allocation0] sm:$0x1] %vm25_vm3, %v24_v6  }
  0x8d   :  { %v29_v8 = vld [vmem:[#allocation0] sm:$0x1] }
  0x8e   :  { %32 = vst [vmem:[%s56_s1] sm:$0x1] %v29_v8 }

// kernel: head_forward.1
= control target key start
LH: loop header
LB: loop body
LE: loop exit
PB: predicated region body
PF: predicated region fallthrough
CT: control target
= control target key end

     0   :  { %vm327_vm0 = vcmask 261120   ;;  %vm535_vm1 = vcmask 130048   ;;  %vm669_vm2 = vcmask 523264   ;;  %vm1064_vm13 = vcmask 1041409   ;;  %s1717_s25 = smov 32   ;;  %s1719_s26 = smov 80   ;;  %s2637_s1 = inlined_call_operand.vmem [shape: bf16[288,16], index: 1, kind: input, shape index: {}]   ;;  %s2638_s0 = inlined_call_operand.vmem [shape: bf16[128,288], index: 0, kind: input, shape index: {}]   ;;  %s2639_s2 = inlined_call_operand.vmem [shape: f32[1,16], index: 2, kind: input, shape index: {}]   ;;  %s2640_s3 = inlined_call_operand.vmem [shape: bf16[16,64], index: 3, kind: input, shape index: {}]   ;;  %s2641_s4 = inlined_call_operand.vmem [shape: f32[1,64], index: 4, kind: input, shape index: {}]   ;;  %s2642_s5 = inlined_call_operand.vmem [shape: bf16[64,16], index: 5, kind: input, shape index: {}]   ;;  %s2643_s6 = inlined_call_operand.vmem [shape: f32[1,16], index: 6, kind: input, shape index: {}]   ;;  %s2644_s7 = inlined_call_operand.vmem [shape: f32[16,128], index: 7, kind: output, shape index: {}]  }
   0x1   :  { %v1621_v0 = vld [vmem:[%s2637_s1 + $0x38] sm:$0xff]  ;;  %v1620_v2 = vld [vmem:[%s2637_s1 + $0x30] sm:$0xff]  ;;  %v1619_v4 = vld [vmem:[%s2637_s1 + $0x28] sm:$0xff]  ;;  %s1720_s27 = smov 96   ;;  %s1721_s28 = smov 64  }
   0x2   :  { %v1629_v1 = vld [vmem:[%s2637_s1 + $0x78] sm:$0xff]  ;;  %352 = vmatpush.bf16.msra.mxu0 %v1621_v0  ;;  %v1628_v3 = vld [vmem:[%s2637_s1 + $0x70] sm:$0xff]  ;;  %v1627_v5 = vld [vmem:[%s2637_s1 + $0x68] sm:$0xff]  ;;  %s1722_s29 = smov 112  }
   0x3   :  { %401 = vmatpush.bf16.msra.mxu1 %v1629_v1  ;;  %v1631_v6 = vld [vmem:[%s2637_s1 + $0x88] sm:$0xff]  ;;  %v1618_v7 = vld [vmem:[%s2637_s1 + $0x20] sm:$0xff]  ;;  %v1617_v9 = vld [vmem:[%s2637_s1 + $0x18] sm:$0xff] }
   0x4   :  { %1638 = vmatpush.bf16.msra.mxu2 %v1631_v6  ;;  %v1626_v8 = vld [vmem:[%s2637_s1 + $0x60] sm:$0xff]  ;;  %v1625_v10 = vld [vmem:[%s2637_s1 + $0x58] sm:$0xff]  ;;  %v1616_v14 = vld [vmem:[%s2637_s1 + $0x10] sm:$0xff] }
   0x5   :  { %v1630_v11 = vld [vmem:[%s2637_s1 + $0x80] sm:$0xff]  ;;  %v1396_v12 = vld [vmem:[%s2638_s0 + $0x38] sm:$0xf]  ;;  %v1624_v15 = vld [vmem:[%s2637_s1 + $0x50] sm:$0xff] }
   0x6   :  { %353 = vmatpush.bf16.msra.mxu0 %v1620_v2  ;;  %v1598_v13 = vld [vmem:[%s2638_s0 + $0x40] sm:$0xf0]  ;;  %v1615_v17 = vld [vmem:[%s2637_s1 + $0x8] sm:$0xff]  ;;  %v1364_v21 = vld [vmem:[%s2638_s0] sm:$0xf] }
   0x7   :  { %402 = vmatpush.bf16.msra.mxu1 %v1628_v3  ;;  %v1397_v16 = vor.u32 %v1598_v13, %v1396_v12  ;;  %v1623_v18 = vld [vmem:[%s2637_s1 + $0x48] sm:$0xff]  ;;  %v1614_v19 = vld [vmem:[%s2637_s1] sm:$0xff]  ;;  %v1366_v24 = vld [vmem:[%s2638_s0 + $0xc] sm:$0xf0] }
   0x8   :  { %1640 = vmatpush.bf16.msra.mxu2 %v1630_v11  ;;  %v1622_v20 = vld [vmem:[%s2637_s1 + $0x40] sm:$0xff]  ;;  %v1591_v22 = vld [vmem:[%s2638_s0 + $0x8] sm:$0xf0]  ;;  %v1408_v27 = vld [vmem:[%s2638_s0 + $0x50] sm:$0xf]  ;;  %s1718_s1 = smov 16  }
   0x9   :  { %v1590_v23 = vld [vmem:[%s2638_s0 + $0x4] sm:$0xf]  ;;  %v1365_v25 = vor.u32 %v1591_v22, %v1364_v21  ;;  %v1601_v28 = vld [vmem:[%s2638_s0 + $0x58] sm:$0xf0]  ;;  %v1376_v30 = vld [vmem:[%s2638_s0 + $0x18] sm:$0xf] }
   0xa   :  { %354 = vmatpush.bf16.msra.mxu0 %v1619_v4  ;;  %v1369_v26 = vor.u32 %v1590_v23, %v1366_v24  ;;  %v1409_v29 = vor.u32 %v1601_v28, %v1408_v27  ;;  %v1594_v31 = vld [vmem:[%s2638_s0 + $0x20] sm:$0xf0]  ;;  %v1593_v32 = vld [vmem:[%s2638_s0 + $0x1c] sm:$0xf]  ;;  %v1378_v33 = vld [vmem:[%s2638_s0 + $0x24] sm:$0xf0] }
   0xb   :  { %403 = vmatpush.bf16.msra.mxu1 %v1627_v5  ;;  %1532 = vmatmul.msk.bf16.vlgmr.msra.gmra.mxu2 %vm327_vm0, %v1397_v16  ;;  %v1377_v34 = vor.u32 %v1594_v31, %v1376_v30  ;;  %v1381_v35 = vor.u32 %v1593_v32, %v1378_v33  ;;  %v1420_v36 = vld [vmem:[%s2638_s0 + $0x68] sm:$0xf]  ;;  %v1604_v37 = vld [vmem:[%s2638_s0 + $0x70] sm:$0xf0]  ;;  %v1388_v39 = vld [vmem:[%s2638_s0 + $0x30] sm:$0xf] }
   0xc   :  { %v1421_v38 = vor.u32 %v1604_v37, %v1420_v36  ;;  %v1597_v40 = vld [vmem:[%s2638_s0 + $0x38] sm:$0xf0]  ;;  %v1596_v41 = vld [vmem:[%s2638_s0 + $0x34] sm:$0xf]  ;;  %v1390_v42 = vld [vmem:[%s2638_s0 + $0x3c] sm:$0xf0] }
   0xd   :  { %v1389_v43 = vor.u32 %v1597_v40, %v1388_v39  ;;  %v1393_v44 = vor.u32 %v1596_v41, %v1390_v42  ;;  %v1432_v45 = vld [vmem:[%s2638_s0 + $0x80] sm:$0xf]  ;;  %v1607_v46 = vld [vmem:[%s2638_s0 + $0x88] sm:$0xf0]  ;;  %v1400_v48 = vld [vmem:[%s2638_s0 + $0x48] sm:$0xf] }
   0xe   :  { %355 = vmatpush.bf16.msra.mxu0 %v1618_v7  ;;  %v1433_v47 = vor.u32 %v1607_v46, %v1432_v45  ;;  %v1600_v49 = vld [vmem:[%s2638_s0 + $0x50] sm:$0xf0]  ;;  %v1599_v50 = vld [vmem:[%s2638_s0 + $0x4c] sm:$0xf]  ;;  %v1402_v51 = vld [vmem:[%s2638_s0 + $0x54] sm:$0xf0] }
   0xf   :  { %404 = vmatpush.bf16.msra.mxu1 %v1626_v8  ;;  %v1401_v52 = vor.u32 %v1600_v49, %v1400_v48  ;;  %v1405_v53 = vor.u32 %v1599_v50, %v1402_v51  ;;  %v1444_v54 = vld [vmem:[%s2638_s0 + $0x98] sm:$0xf]  ;;  %v1610_v55 = vld [vmem:[%s2638_s0 + $0xa0] sm:$0xf0]  ;;  %v1412_v57 = vld [vmem:[%s2638_s0 + $0x60] sm:$0xf] }
  0x10   :  { %v1445_v56 = vor.u32 %v1610_v55, %v1444_v54  ;;  %v1603_v58 = vld [vmem:[%s2638_s0 + $0x68] sm:$0xf0]  ;;  %v1602_v59 = vld [vmem:[%s2638_s0 + $0x64] sm:$0xf]  ;;  %v1414_v60 = vld [vmem:[%s2638_s0 + $0x6c] sm:$0xf0] }
  0x11   :  { %v1413_v61 = vor.u32 %v1603_v58, %v1412_v57  ;;  %v1417_v62 = vor.u32 %v1602_v59, %v1414_v60  ;;  %v1456_v63 = vld [vmem:[%s2638_s0 + $0xb0] sm:$0xf]  ;;  %v1613_v0 = vld [vmem:[%s2638_s0 + $0xb8] sm:$0xf0]  ;;  %v1424_v2 = vld [vmem:[%s2638_s0 + $0x78] sm:$0xf] }
  0x12   :  { %356 = vmatpush.bf16.msra.mxu0 %v1617_v9  ;;  %v1457_v1 = vor.u32 %v1613_v0, %v1456_v63  ;;  %v1606_v3 = vld [vmem:[%s2638_s0 + $0x80] sm:$0xf0]  ;;  %v1605_v4 = vld [vmem:[%s2638_s0 + $0x7c] sm:$0xf]  ;;  %v1426_v5 = vld [vmem:[%s2638_s0 + $0x84] sm:$0xf0] }
  0x13   :  { %405 = vmatpush.bf16.msra.mxu1 %v1625_v10  ;;  %v1429_v7 = vor.u32 %v1605_v4, %v1426_v5  ;;  %v1436_v8 = vld [vmem:[%s2638_s0 + $0x90] sm:$0xf]  ;;  %v1609_v9 = vld [vmem:[%s2638_s0 + $0x98] sm:$0xf0]  ;;  %v1608_v10 = vld [vmem:[%s2638_s0 + $0x94] sm:$0xf] }
  0x14   :  { %v1437_v12 = vor.u32 %v1609_v9, %v1436_v8  ;;  %v1611_v16 = vld [vmem:[%s2638_s0 + $0xac] sm:$0xf]  ;;  %v1592_v21 = vld [vmem:[%s2638_s0 + $0x10] sm:$0xf0]  ;;  %v1384_v22 = vld [vmem:[%s2638_s0 + $0x20] sm:$0xf] }
  0x15   :  { %v1595_v23 = vld [vmem:[%s2638_s0 + $0x28] sm:$0xf0]  ;;  %v1970_v24 = vld [vmem:[%s2639_s2] ss:$0 sm:$0xff] }
  0x16   :  { %357 = vmatpush.bf16.msra.mxu0 %v1616_v14  ;;  %v1448_v14 = vld [vmem:[%s2638_s0 + $0xa8] sm:$0xf]  ;;  %v1632_v39 = vld [vmem:[%s2640_s3] sm:$0xff] }
  0x17   :  { %406 = vmatpush.bf16.msra.mxu1 %v1624_v15  ;;  %v1612_v15 = vld [vmem:[%s2638_s0 + $0xb0] sm:$0xf0]  ;;  %567 = vmatpush.bf16.msrb.mxu2 %v1632_v39 }
  0x18   :  { %1641 = vmatpush.bf16.msra.mxu3 %v1632_v39 }
  0x1a   :  { %358 = vmatpush.bf16.msra.mxu0 %v1615_v17  ;;  %v1450_v17 = vld [vmem:[%s2638_s0 + $0xb4] sm:$0xf0] }
  0x1b   :  { %407 = vmatpush.bf16.msra.mxu1 %v1623_v18  ;;  %1533 = vmatmul.msk.bf16.gmra.mxu2 %vm327_vm0, %v1409_v29  ;;  %v1449_v18 = vor.u32 %v1612_v15, %v1448_v14 }
  0x1e   :  { %359 = vmatpush.bf16.msra.mxu0 %v1614_v19  ;;  %v1453_v19 = vor.u32 %v1611_v16, %v1450_v17 }
  0x1f   :  { %408 = vmatpush.bf16.msra.mxu1 %v1622_v20  ;;  %v1372_v20 = vld [vmem:[%s2638_s0 + $0x8] sm:$0xf] }
  0x21   :  { %360 = vmatmul.bf16.vlgmr.msra.gmra.mxu0 %v1365_v25  ;;  %v1373_v25 = vor.u32 %v1592_v21, %v1372_v20 }
  0x22   :  { %456 = vmatpush.bf16.msrb.mxu0 %v1631_v6  ;;  %409 = vmatmul.bf16.vlgmr.msra.gmra.mxu1 %v1369_v26  ;;  %v1385_v26 = vor.u32 %v1595_v23, %v1384_v22 }
  0x23   :  { %1637 = vmatpush.bf16.msrb.mxu1 %v1631_v6  ;;  %v1425_v6 = vor.u32 %v1606_v3, %v1424_v2 }
  0x26   :  { %457 = vmatpush.bf16.msrb.mxu0 %v1630_v11 }
  0x27   :  { %1639 = vmatpush.bf16.msrb.mxu1 %v1630_v11  ;;  %v1438_v11 = vld [vmem:[%s2638_s0 + $0x9c] sm:$0xf0] }
  0x28   :  { %v1441_v13 = vor.u32 %v1608_v10, %v1438_v11 }
  0x2b   :  { %1534 = vmatmul.msk.bf16.gmra.mxu2 %vm327_vm0, %v1421_v38 }
  0x31   :  { %365 = vmatmul.bf16.gmra.mxu0 %v1377_v34 }
  0x32   :  { %414 = vmatmul.bf16.gmra.mxu1 %v1381_v35 }
  0x3b   :  { %1535 = vmatmul.msk.bf16.gmra.mxu2 %vm327_vm0, %v1433_v47 }
  0x41   :  { %370 = vmatmul.bf16.gmra.mxu0 %v1389_v43 }
  0x42   :  { %419 = vmatmul.bf16.gmra.mxu1 %v1393_v44 }
  0x4b   :  { %1536 = vmatmul.msk.bf16.gmra.mxu2 %vm327_vm0, %v1445_v56 }
  0x51   :  { %375 = vmatmul.bf16.gmra.mxu0 %v1401_v52 }
  0x52   :  { %424 = vmatmul.bf16.gmra.mxu1 %v1405_v53 }
  0x5b   :  { %1537 = vmatmul.msk.bf16.gmra.mxu2 %vm327_vm0, %v1457_v1 }
  0x61   :  { %380 = vmatmul.bf16.gmra.mxu0 %v1413_v61 }
  0x62   :  { %429 = vmatmul.bf16.gmra.mxu1 %v1417_v62 }
  0x71   :  { %385 = vmatmul.bf16.gmra.mxu0 %v1425_v6 }
  0x72   :  { %434 = vmatmul.bf16.gmra.mxu1 %v1429_v7 }
  0x81   :  { %390 = vmatmul.bf16.gmra.mxu0 %v1437_v12 }
  0x82   :  { %439 = vmatmul.bf16.gmra.mxu1 %v1441_v13 }
  0x8e   :  { %v469_v35 = vpop.f32.mrf.mxu2 }
  0x91   :  { %395 = vmatmul.bf16.gmra.mxu0 %v1449_v18 }
  0x92   :  { %444 = vmatmul.bf16.gmra.mxu1 %v1453_v19 }
  0x96   :  { %v471_v41 = vpop.f32.mrf.mxu2 }
  0x9e   :  { %v361_v27 = vpop.f32.mrf.mxu0  ;;  %v474_v46 = vpop.f32.mrf.mxu2 }
  0x9f   :  { %v410_v28 = vpop.f32.mrf.mxu1  ;;  %v362_v29 = vadd.f32 %v1970_v24, %v361_v27 }
  0xa1   :  { %v1973_v30 = vadd.f32 %v410_v28, %v362_v29  ;;  %1530 = vmatmul.msk.bf16.vlgmr.msrb.gmra.mxu0 %vm327_vm0, %v1373_v25 }
  0xa2   :  { %1531 = vmatmul.msk.bf16.vlgmr.msrb.gmra.mxu1 %vm327_vm0, %v1385_v26 }
  0xa6   :  { %v363_v31 = vpop.f32.mrf.mxu0  ;;  %v476_v55 = vpop.f32.mrf.mxu2 }
  0xa7   :  { %v412_v32 = vpop.f32.mrf.mxu1  ;;  %v364_v33 = vadd.f32 %v1970_v24, %v363_v31 }
  0xa9   :  { %v1978_v34 = vadd.f32 %v412_v32, %v364_v33 }
  0xae   :  { %v366_v36 = vpop.f32.mrf.mxu0  ;;  %v479_v1 = vpop.f32.mrf.mxu2 }
  0xaf   :  { %v415_v37 = vpop.f32.mrf.mxu1  ;;  %v367_v38 = vadd.f32 %v1970_v24, %v366_v36 }
  0xb1   :  { %v1984_v40 = vadd.f32 %v415_v37, %v367_v38 }
  0xb6   :  { %v368_v42 = vpop.f32.mrf.mxu0  ;;  %v481_v8 = vpop.f32.mrf.mxu2 }
  0xb7   :  { %v417_v43 = vpop.f32.mrf.mxu1  ;;  %v369_v44 = vadd.f32 %v1970_v24, %v368_v42 }
  0xb9   :  { %v1987_v45 = vadd.f32 %v417_v43, %v369_v44 }
  0xbe   :  { %v371_v47 = vpop.f32.mrf.mxu0  ;;  %v484_v17 = vpop.f32.mrf.mxu2 }
  0xbf   :  { %v420_v48 = vpop.f32.mrf.mxu1  ;;  %v372_v49 = vadd.f32 %v1970_v24, %v371_v47 }
  0xc1   :  { %v421_v50 = vadd.f32 %v420_v48, %v372_v49 }
  0xc3   :  { %v470_v51 = vadd.f32 %v469_v35, %v421_v50 }
  0xc5   :  { %v503_v58 = vmax.f32 %v470_v51, 0.0 }
  0xc6   :  { %v373_v52 = vpop.f32.mrf.mxu0  ;;  %v486_v29 = vpop.f32.mrf.mxu2 }
  0xc7   :  { %v422_v53 = vpop.f32.mrf.mxu1  ;;  %v374_v54 = vadd.f32 %v1970_v24, %v373_v52 }
  0xc9   :  { %v423_v56 = vadd.f32 %v422_v53, %v374_v54 }
  0xcb   :  { %v472_v57 = vadd.f32 %v471_v41, %v423_v56 }
  0xcd   :  { %v504_v59 = vmax.f32 %v472_v57, 0.0 }
  0xce   :  { %v376_v60 = vpop.f32.mrf.mxu0  ;;  %v489_v39 = vpop.f32.mrf.mxu2 }
  0xcf   :  { %v425_v61 = vpop.f32.mrf.mxu1  ;;  %v1991_v62 = vpack.c.bf16 %v504_v59, %v503_v58  ;;  %v377_v63 = vadd.f32 %v1970_v24, %v376_v60 }
  0xd1   :  { %v426_v0 = vadd.f32 %v425_v61, %v377_v63 }
  0xd3   :  { %v475_v2 = vadd.f32 %v474_v46, %v426_v0 }
  0xd5   :  { %v505_v9 = vmax.f32 %v475_v2, 0.0 }
  0xd6   :  { %v378_v3 = vpop.f32.mrf.mxu0  ;;  %v491_v49 = vpop.f32.mrf.mxu2 }
  0xd7   :  { %v427_v4 = vpop.f32.mrf.mxu1  ;;  %v379_v5 = vadd.f32 %v1970_v24, %v378_v3 }
  0xd9   :  { %v428_v6 = vadd.f32 %v427_v4, %v379_v5 }
  0xdb   :  { %v477_v7 = vadd.f32 %v476_v55, %v428_v6 }
  0xdd   :  { %v506_v10 = vmax.f32 %v477_v7, 0.0 }
  0xde   :  { %v381_v11 = vpop.f32.mrf.mxu0  ;;  %v494_v59 = vpop.f32.mrf.mxu2 }
  0xdf   :  { %v430_v12 = vpop.f32.mrf.mxu1  ;;  %v1995_v13 = vpack.c.bf16 %v506_v10, %v505_v9  ;;  %v382_v14 = vadd.f32 %v1970_v24, %v381_v11 }
  0xe1   :  { %v431_v15 = vadd.f32 %v430_v12, %v382_v14 }
  0xe3   :  { %v480_v16 = vadd.f32 %v479_v1, %v431_v15 }
  0xe5   :  { %v507_v23 = vmax.f32 %v480_v16, 0.0 }
  0xe6   :  { %v383_v18 = vpop.f32.mrf.mxu0  ;;  %v496_v5 = vpop.f32.mrf.mxu2 }
  0xe7   :  { %v432_v19 = vpop.f32.mrf.mxu1  ;;  %v384_v20 = vadd.f32 %v1970_v24, %v383_v18 }
  0xe9   :  { %v433_v21 = vadd.f32 %v432_v19, %v384_v20 }
  0xeb   :  { %v482_v22 = vadd.f32 %v481_v8, %v433_v21 }
  0xed   :  { %v508_v25 = vmax.f32 %v482_v22, 0.0 }
  0xee   :  { %v386_v26 = vpop.f32.mrf.mxu0 }
  0xef   :  { %v435_v27 = vpop.f32.mrf.mxu1  ;;  %v1999_v28 = vpack.c.bf16 %v508_v25, %v507_v23  ;;  %v387_v31 = vadd.f32 %v1970_v24, %v386_v26 }
  0xf1   :  { %v436_v32 = vadd.f32 %v435_v27, %v387_v31 }
  0xf3   :  { %v485_v37 = vadd.f32 %v484_v17, %v436_v32 }
  0xf5   :  { %v509_v42 = vmax.f32 %v485_v37, 0.0 }
  0xf6   :  { %v388_v33 = vpop.f32.mrf.mxu0 }
  0xf7   :  { %v437_v35 = vpop.f32.mrf.mxu1  ;;  %v389_v36 = vadd.f32 %v1970_v24, %v388_v33 }
  0xf9   :  { %v438_v38 = vadd.f32 %v437_v35, %v389_v36 }
  0xfb   :  { %v487_v41 = vadd.f32 %v486_v29, %v438_v38 }
  0xfd   :  { %v510_v43 = vmax.f32 %v487_v41, 0.0 }
  0xfe   :  { %v391_v44 = vpop.f32.mrf.mxu0 }
  0xff   :  { %v440_v46 = vpop.f32.mrf.mxu1  ;;  %v520_v47 = vpack.c.bf16 %v510_v43, %v509_v42  ;;  %v392_v48 = vadd.f32 %v1970_v24, %v391_v44 }
 0x101   :  { %1547 = vmatmul.msk.bf16.vlgmr.msra.gmra.mxu3 %vm535_vm1, %v520_v47  ;;  %v441_v50 = vadd.f32 %v440_v46, %v392_v48 }
 0x103   :  { %v490_v54 = vadd.f32 %v489_v39, %v441_v50 }
 0x105   :  { %v511_v57 = vmax.f32 %v490_v54, 0.0 }
 0x106   :  { %v393_v51 = vpop.f32.mrf.mxu0 }
 0x107   :  { %v442_v52 = vpop.f32.mrf.mxu1  ;;  %v394_v53 = vadd.f32 %v1970_v24, %v393_v51 }
 0x109   :  { %v443_v55 = vadd.f32 %v442_v52, %v394_v53 }
 0x10b   :  { %v492_v56 = vadd.f32 %v491_v49, %v443_v55 }
 0x10d   :  { %v512_v58 = vmax.f32 %v492_v56, 0.0 }
 0x10e   :  { %v396_v60 = vpop.f32.mrf.mxu0 }
 0x10f   :  { %v445_v61 = vpop.f32.mrf.mxu1  ;;  %v521_v63 = vpack.c.bf16 %v512_v58, %v511_v57  ;;  %v397_v0 = vadd.f32 %v1970_v24, %v396_v60 }
 0x111   :  { %1548 = vmatmul.msk.bf16.gmra.mxu3 %vm535_vm1, %v521_v63  ;;  %v446_v1 = vadd.f32 %v445_v61, %v397_v0 }
 0x113   :  { %v495_v6 = vadd.f32 %v494_v59, %v446_v1 }
 0x115   :  { %v513_v9 = vmax.f32 %v495_v6, 0.0 }
 0x116   :  { %v398_v2 = vpop.f32.mrf.mxu0 }
 0x117   :  { %v447_v3 = vpop.f32.mrf.mxu1  ;;  %v399_v4 = vadd.f32 %v1970_v24, %v398_v2 }
 0x119   :  { %v448_v7 = vadd.f32 %v447_v3, %v399_v4 }
 0x11b   :  { %v497_v8 = vadd.f32 %v496_v5, %v448_v7 }
 0x11d   :  { %v514_v10 = vmax.f32 %v497_v8, 0.0 }
 0x11e   :  { %v459_v11 = vpop.f32.mrf.mxu0 }
 0x11f   :  { %v464_v12 = vpop.f32.mrf.mxu1  ;;  %v522_v14 = vpack.c.bf16 %v514_v10, %v513_v9  ;;  %v460_v15 = vadd.f32 %v459_v11, %v1973_v30  ;;  %v1636_v30 = vld [vmem:[%s2642_s5 + $0x18] sm:$0xff] }
 0x120   :  { %v465_v16 = vadd.f32 %v464_v12, %v1984_v40  ;;  %698 = vmatpush.bf16.msrb.mxu3 %v1636_v30  ;;  %v1634_v40 = vld [vmem:[%s2642_s5 + $0x8] sm:$0xff] }
 0x121   :  { %1549 = vmatmul.msk.bf16.gmra.mxu3 %vm535_vm1, %v522_v14  ;;  %v499_v20 = vmax.f32 %v460_v15, 0.0 }
 0x122   :  { %v501_v21 = vmax.f32 %v465_v16, 0.0 }
 0x126   :  { %v461_v17 = vpop.f32.mrf.mxu0 }
 0x127   :  { %v466_v18 = vpop.f32.mrf.mxu1  ;;  %v462_v19 = vadd.f32 %v461_v17, %v1978_v34  ;;  %v1635_v34 = vld [vmem:[%s2642_s5 + $0x10] sm:$0xff] }
 0x128   :  { %v467_v24 = vadd.f32 %v466_v18, %v1987_v45  ;;  %699 = vmatpush.bf16.msrb.mxu3 %v1635_v34  ;;  %v1633_v45 = vld [vmem:[%s2642_s5] sm:$0xff] }
 0x129   :  { %v500_v22 = vmax.f32 %v462_v19, 0.0 }
 0x12a   :  { %v502_v23 = vmax.f32 %v467_v24, 0.0 }
 0x12b   :  { %v515_v25 = vpack.c.bf16 %v500_v22, %v499_v20 }
 0x12c   :  { %v516_v26 = vpack.c.bf16 %v502_v23, %v501_v21  ;;  %700 = vmatpush.bf16.msrb.mxu3 %v1634_v40  ;;  %v2048_v23 = vld [vmem:[%s2643_s6] ss:$0 sm:$0xff]  ;;  %s1716_s6 = smov 48  }
 0x12d   :  { %1542 = vmatmul.msk.bf16.vlgmr.msrb.gmra.mxu2 %vm535_vm1, %v515_v25 }
 0x130   :  { %701 = vmatpush.bf16.msrb.mxu3 %v1633_v45 }
 0x13d   :  { %1543 = vmatmul.msk.bf16.gmra.mxu2 %vm535_vm1, %v516_v26 }
 0x14d   :  { %1544 = vmatmul.msk.bf16.gmra.mxu2 %vm535_vm1, %v1991_v62 }
 0x15d   :  { %1545 = vmatmul.msk.bf16.gmra.mxu2 %vm535_vm1, %v1995_v13  ;;  %v1650_v13 = vld [vmem:[%s2641_s4] ss:$0 sm:$0xff] }
 0x16d   :  { %1546 = vmatmul.msk.bf16.gmra.mxu2 %vm535_vm1, %v1999_v28 }
 0x184   :  { %v594_v58 = vpop.f32.mrf.mxu3 }
 0x185   :  { %v595_v6 = vadd.f32 %v1650_v13, %v594_v58 }
 0x187   :  { %v619_v8 = vmax.f32 %v595_v6, 0.0 }
 0x18c   :  { %v596_v0 = vpop.f32.mrf.mxu3 }
 0x18d   :  { %v597_v5 = vadd.f32 %v1650_v13, %v596_v0 }
 0x18f   :  { %v620_v7 = vmax.f32 %v597_v5, 0.0 }
 0x191   :  { %v630_v9 = vpack.c.bf16 %v620_v7, %v619_v8 }
 0x194   :  { %v599_v4 = vpop.f32.mrf.mxu3 }
 0x195   :  { %v600_v12 = vadd.f32 %v1650_v13, %v599_v4 }
 0x197   :  { %v621_v16 = vmax.f32 %v600_v12, 0.0 }
 0x19c   :  { %v601_v10 = vpop.f32.mrf.mxu3 }
 0x19d   :  { %v602_v11 = vadd.f32 %v1650_v13, %v601_v10 }
 0x19f   :  { %v622_v15 = vmax.f32 %v602_v11, 0.0 }
 0x1a1   :  { %v631_v17 = vpack.c.bf16 %v622_v15, %v621_v16 }
 0x1a4   :  { %v604_v14 = vpop.f32.mrf.mxu3 }
 0x1a5   :  { %v605_v24 = vadd.f32 %v1650_v13, %v604_v14 }
 0x1a7   :  { %v623_v21 = vmax.f32 %v605_v24, 0.0 }
 0x1ac   :  { %v606_v18 = vpop.f32.mrf.mxu3 }
 0x1ad   :  { %v607_v19 = vadd.f32 %v1650_v13, %v606_v18 }
 0x1af   :  { %v624_v20 = vmax.f32 %v607_v19, 0.0 }
 0x1b0   :  { %v569_v62 = vpop.f32.mrf.mxu2 }
 0x1b1   :  { %v570_v27 = vadd.f32 %v1650_v13, %v569_v62  ;;  %v632_v22 = vpack.c.bf16 %v624_v20, %v623_v21 }
 0x1b3   :  { %v609_v31 = vmax.f32 %v570_v27, 0.0 }
 0x1b8   :  { %v571_v28 = vpop.f32.mrf.mxu2 }
 0x1b9   :  { %v572_v29 = vadd.f32 %v1650_v13, %v571_v28 }
 0x1bb   :  { %v610_v32 = vmax.f32 %v572_v29, 0.0 }
 0x1bd   :  { %v625_v33 = vpack.c.bf16 %v610_v32, %v609_v31 }
 0x1bf   :  { %1566 = vmatmul.msk.bf16.vlgmr.msrb.gmra.mxu3 %vm669_vm2, %v625_v33 }
 0x1c0   :  { %v574_v35 = vpop.f32.mrf.mxu2 }
 0x1c1   :  { %v575_v36 = vadd.f32 %v1650_v13, %v574_v35 }
 0x1c3   :  { %v611_v39 = vmax.f32 %v575_v36, 0.0 }
 0x1c8   :  { %v576_v37 = vpop.f32.mrf.mxu2 }
 0x1c9   :  { %v577_v38 = vadd.f32 %v1650_v13, %v576_v37 }
 0x1cb   :  { %v612_v41 = vmax.f32 %v577_v38, 0.0 }
 0x1cd   :  { %v626_v42 = vpack.c.bf16 %v612_v41, %v611_v39 }
 0x1cf   :  { %1567 = vmatmul.msk.bf16.gmra.mxu3 %vm669_vm2, %v626_v42 }
 0x1d0   :  { %v579_v43 = vpop.f32.mrf.mxu2 }
 0x1d1   :  { %v580_v44 = vadd.f32 %v1650_v13, %v579_v43 }
 0x1d3   :  { %v613_v48 = vmax.f32 %v580_v44, 0.0 }
 0x1d8   :  { %v581_v46 = vpop.f32.mrf.mxu2 }
 0x1d9   :  { %v582_v47 = vadd.f32 %v1650_v13, %v581_v46 }
 0x1db   :  { %v614_v49 = vmax.f32 %v582_v47, 0.0 }
 0x1dd   :  { %v627_v50 = vpack.c.bf16 %v614_v49, %v613_v48 }
 0x1df   :  { %1568 = vmatmul.msk.bf16.gmra.mxu3 %vm669_vm2, %v627_v50 }
 0x1e0   :  { %v584_v51 = vpop.f32.mrf.mxu2 }
 0x1e1   :  { %v585_v52 = vadd.f32 %v1650_v13, %v584_v51 }
 0x1e3   :  { %v615_v55 = vmax.f32 %v585_v52, 0.0 }
 0x1e8   :  { %v586_v53 = vpop.f32.mrf.mxu2 }
 0x1e9   :  { %v587_v54 = vadd.f32 %v1650_v13, %v586_v53 }
 0x1eb   :  { %v616_v56 = vmax.f32 %v587_v54, 0.0 }
 0x1ed   :  { %v628_v57 = vpack.c.bf16 %v616_v56, %v615_v55 }
 0x1ef   :  { %1569 = vmatmul.msk.bf16.gmra.mxu3 %vm669_vm2, %v628_v57 }
 0x1f0   :  { %v589_v59 = vpop.f32.mrf.mxu2 }
 0x1f1   :  { %v590_v60 = vadd.f32 %v1650_v13, %v589_v59 }
 0x1f3   :  { %v617_v1 = vmax.f32 %v590_v60, 0.0 }
 0x1f8   :  { %v591_v61 = vpop.f32.mrf.mxu2 }
 0x1f9   :  { %v592_v63 = vadd.f32 %v1650_v13, %v591_v61 }
 0x1fb   :  { %v618_v2 = vmax.f32 %v592_v63, 0.0 }
 0x1fd   :  { %v629_v3 = vpack.c.bf16 %v618_v2, %v617_v1 }
 0x1ff   :  { %1570 = vmatmul.msk.bf16.gmra.mxu3 %vm669_vm2, %v629_v3 }
 0x20f   :  { %1571 = vmatmul.msk.bf16.gmra.mxu3 %vm669_vm2, %v630_v9 }
 0x21f   :  { %1572 = vmatmul.msk.bf16.gmra.mxu3 %vm669_vm2, %v631_v17 }
 0x22f   :  { %1573 = vmatmul.msk.bf16.gmra.mxu3 %vm669_vm2, %v632_v22 }
 0x242   :  { %v703_v25 = vpop.f32.mrf.mxu3 }
 0x243   :  { %v704_v26 = vadd.f32 %v2048_v23, %v703_v25 }
 0x245   :  { %v1574_v30 = vmul.f32 -1.442695, %v704_v26 }
 0x247   :  { %1652 = vpow2.f32 %v1574_v30 }
 0x24a   :  { %v705_v34 = vpop.f32.mrf.mxu3 }
 0x24b   :  { %v706_v40 = vadd.f32 %v2048_v23, %v705_v34 }
 0x24d   :  { %v1653_v45 = vpop.eup %1652  ;;  %v1575_v62 = vmul.f32 -1.442695, %v706_v40 }
 0x24e   :  { %v791_v13 = vadd.f32 1.0, %v1653_v45 }
 0x24f   :  { %1654 = vpow2.f32 %v1575_v62 }
 0x250   :  { %1656 = vrcp.f32 %v791_v13  ;;  %vm812_vm5 = vweird.f32 %v791_v13  ;;  %v818_v58 = vand.u32 2147483648, %v791_v13  ;;  %v816_v61 = vand.u32 2147483647, %v791_v13 }
 0x252   :  { %v708_v27 = vpop.f32.mrf.mxu3  ;;  %v819_v7 = vor.u32 1.1754944e-38, %v818_v58  ;;  %vm817_vm9 = vcmp.eq.f32.partialorder %v816_v61, 8.507059e+37 }
 0x253   :  { %v709_v28 = vadd.f32 %v2048_v23, %v708_v27 }
 0x255   :  { %v1655_v29 = vpop.eup %1654  ;;  %v1576_v31 = vmul.f32 -1.442695, %v709_v28 }
 0x256   :  { %v792_v32 = vadd.f32 1.0, %v1655_v29  ;;  %v1657_v33 = vpop.eup %1656 }
 0x257   :  { %1658 = vpow2.f32 %v1576_v31  ;;  %v808_v35 = vmul.f32 %v1657_v33, %v791_v13  ;;  %vm813_vm3 = vweird.f32 %v1657_v33 }
 0x258   :  { %1660 = vrcp.f32 %v792_v32  ;;  %v833_v59 = vand.u32 2147483648, %v792_v32  ;;  %vm2061_vm6 = vmor %vm812_vm5, %vm813_vm3  ;;  %vm827_vm7 = vweird.f32 %v792_v32  ;;  %v831_v63 = vand.u32 2147483647, %v792_v32 }
 0x259   :  { %v809_v42 = vsub.f32 1.0, %v808_v35  ;;  %vm1067_vm3 = vcmask 1042434  }
 0x25a   :  { %v710_v36 = vpop.f32.mrf.mxu3  ;;  %v834_v8 = vor.u32 1.1754944e-38, %v833_v59  ;;  %vm832_vm10 = vcmp.eq.f32.partialorder %v831_v63, 8.507059e+37 }
 0x25b   :  { %v711_v37 = vadd.f32 %v2048_v23, %v710_v36  ;;  %v810_v47 = vmul.f32 %v1657_v33, %v809_v42 }
 0x25d   :  { %v1659_v38 = vpop.eup %1658  ;;  %v1577_v39 = vmul.f32 -1.442695, %v711_v37  ;;  %v811_v54 = vadd.f32 %v1657_v33, %v810_v47 }
 0x25e   :  { %v1661_v41 = vpop.eup %1660  ;;  %v793_v43 = vadd.f32 1.0, %v1659_v38 }
 0x25f   :  { %v823_v44 = vmul.f32 %v1661_v41, %v792_v32  ;;  %1662 = vpow2.f32 %v1577_v39  ;;  %vm828_vm4 = vweird.f32 %v1661_v41  ;;  %v815_v3 = vsel %vm2061_vm6, %v1657_v33, %v811_v54 }
 0x260   :  { %1664 = vrcp.f32 %v793_v43  ;;  %vm2065_vm8 = vmor %vm827_vm7, %vm828_vm4  ;;  %v846_v10 = vand.u32 2147483647, %v793_v43  ;;  %v2077_v14 = vsel %vm817_vm9, %v819_v7, %v815_v3  ;;  %v848_v16 = vand.u32 2147483648, %v793_v43 }
 0x261   :  { %v824_v46 = vsub.f32 1.0, %v823_v44  ;;  %vm842_vm12 = vweird.f32 %v793_v43  ;;  %v1168_v21 = vrot.slane %v2077_v14, 3  ;;  %v1134_v34 = vrot.slane %v2077_v14, 2 }
 0x262   :  { %v713_v48 = vpop.f32.mrf.mxu3  ;;  %vm2088_vm14 = vcmp.eq.f32.partialorder %v846_v10, 8.507059e+37  ;;  %v849_v26 = vor.u32 1.1754944e-38, %v848_v16  ;;  %v1100_v40 = vrot.slane %v2077_v14, 1  ;;  %v1236_v45 = vrot.slane %v2077_v14, 5 }
 0x263   :  { %v825_v49 = vmul.f32 %v1661_v41, %v824_v46  ;;  %v714_v50 = vadd.f32 %v2048_v23, %v713_v48  ;;  %v1304_v28 = vrot.slane %v2077_v14, 7  ;;  %v1270_v32 = vrot.slane %v2077_v14, 6 }
 0x264   :  { %v1202_v33 = vrot.slane %v2077_v14, 4 }
 0x265   :  { %v1663_v51 = vpop.eup %1662  ;;  %v1578_v52 = vmul.f32 -1.442695, %v714_v50  ;;  %v826_v56 = vadd.f32 %v1661_v41, %v825_v49 }
 0x266   :  { %v2055_v53 = vpop.eup %1664  ;;  %v2057_v55 = vadd.f32 1.0, %v1663_v51 }
 0x267   :  { %v838_v57 = vmul.f32 %v2055_v53, %v793_v43  ;;  %1666 = vpow2.f32 %v1578_v52  ;;  %v830_v4 = vsel %vm2065_vm8, %v1661_v41, %v826_v56  ;;  %vm843_vm11 = vweird.f32 %v2055_v53 }
 0x268   :  { %1668 = vrcp.f32 %v2057_v55  ;;  %v2079_v15 = vsel %vm832_vm10, %v834_v8, %v830_v4  ;;  %vm2094_vm15 = vmor %vm842_vm12, %vm843_vm11  ;;  %v861_v29 = vand.u32 2147483647, %v2057_v55  ;;  %v863_v31 = vand.u32 2147483648, %v2057_v55 }
 0x269   :  { %v839_v0 = vsub.f32 1.0, %v838_v57  ;;  %v1305_v22 = vrot.slane %v2079_v15, 6  ;;  %v1169_v37 = vrot.slane %v2079_v15, 2  ;;  %v1135_v38 = vrot.slane %v2079_v15, 1 }
 0x26a   :  { %v715_v2 = vpop.f32.mrf.mxu3  ;;  %v1237_v44 = vrot.slane %v2079_v15, 4  ;;  %v1271_v46 = vrot.slane %v2079_v15, 5  ;;  %vm857_vm5 = vweird.f32 %v2057_v55  ;;  %vm2129_vm6 = vcmp.eq.f32.partialorder %v861_v29, 8.507059e+37 }
 0x26b   :  { %v840_v5 = vmul.f32 %v2055_v53, %v839_v0  ;;  %v716_v6 = vadd.f32 %v2048_v23, %v715_v2  ;;  %v1306_v39 = vsel %vm1064_vm13, %v1305_v22, %v1304_v28  ;;  %v1203_v50 = vrot.slane %v2079_v15, 3 }
 0x26c   :  { %v864_v51 = vor.u32 1.1754944e-38, %v863_v31  ;;  %v1170_v57 = vsel %vm1064_vm13, %v1169_v37, %v1168_v21  ;;  %v1136_v58 = vsel %vm1064_vm13, %v1135_v38, %v1134_v34  ;;  %v1238_v59 = vsel %vm1064_vm13, %v1237_v44, %v1236_v45 }
 0x26d   :  { %v1667_v9 = vpop.eup %1666  ;;  %v1579_v11 = vmul.f32 -1.442695, %v716_v6  ;;  %v841_v18 = vadd.f32 %v2055_v53, %v840_v5  ;;  %v1063_v60 = vrot.slane %v2079_v15, 7  ;;  %v1272_v1 = vsel %vm1064_vm13, %v1271_v46, %v1270_v32 }
 0x26e   :  { %v2075_v12 = vpop.eup %1668  ;;  %v2081_v17 = vadd.f32 1.0, %v1667_v9  ;;  %vm1070_vm8 = vcmask 1043459   ;;  %v1204_v5 = vsel %vm1064_vm13, %v1203_v50, %v1202_v33 }
 0x26f   :  { %v853_v19 = vmul.f32 %v2075_v12, %v2057_v55  ;;  %1670 = vpow2.f32 %v1579_v11  ;;  %v845_v62 = vsel %vm2094_vm15, %v2055_v53, %v841_v18  ;;  %vm858_vm4 = vweird.f32 %v2075_v12 }
 0x270   :  { %1672 = vrcp.f32 %v2081_v17  ;;  %v2118_v42 = vsel %vm2088_vm14, %v849_v26, %v845_v62  ;;  %v1101_v53 = vsel %vm1064_vm13, %v2079_v15, %v1100_v40  ;;  %vm2138_vm7 = vmor %vm857_vm5, %vm858_vm4  ;;  %v876_v2 = vand.u32 2147483647, %v2081_v17 }
 0x271   :  { %v854_v20 = vsub.f32 1.0, %v853_v19  ;;  %v1307_v54 = vrot.slane %v2118_v42, 5  ;;  %v878_v3 = vand.u32 2147483648, %v2081_v17  ;;  %v1171_v4 = vrot.slane %v2118_v42, 1 }
 0x272   :  { %v718_v30 = vpop.f32.mrf.mxu3  ;;  %v1102_v8 = vrot.slane %v2118_v42, 7  ;;  %v1239_v9 = vrot.slane %v2118_v42, 3  ;;  %v1273_v16 = vrot.slane %v2118_v42, 4  ;;  %v1205_v18 = vrot.slane %v2118_v42, 2 }
 0x273   :  { %v855_v13 = vmul.f32 %v2075_v12, %v854_v20  ;;  %v719_v27 = vadd.f32 %v2048_v23, %v718_v30  ;;  %v1308_v10 = vsel %vm1067_vm3, %v1307_v54, %v1306_v39  ;;  %vm872_vm10 = vweird.f32 %v2081_v17 }
 0x274   :  { %vm2174_vm11 = vcmp.eq.f32.partialorder %v876_v2, 8.507059e+37  ;;  %v1137_v21 = vsel %vm1067_vm3, %v2118_v42, %v1136_v58  ;;  %v879_v22 = vor.u32 1.1754944e-38, %v878_v3  ;;  %v1172_v26 = vsel %vm1067_vm3, %v1171_v4, %v1170_v57 }
 0x275   :  { %v1671_v35 = vpop.eup %1670  ;;  %v1580_v36 = vmul.f32 -1.442695, %v719_v27  ;;  %v856_v47 = vadd.f32 %v2075_v12, %v855_v13  ;;  %v1103_v40 = vsel %vm1067_vm3, %v1102_v8, %v1101_v53  ;;  %v1240_v45 = vsel %vm1067_vm3, %v1239_v9, %v1238_v59 }
 0x276   :  { %v2114_v41 = vpop.eup %1672  ;;  %v2120_v43 = vadd.f32 1.0, %v1671_v35  ;;  %v1274_v62 = vsel %vm1067_vm3, %v1273_v16, %v1272_v1  ;;  %v1206_v13 = vsel %vm1067_vm3, %v1205_v18, %v1204_v5  ;;  %v1066_v29 = vrot.slane %v2118_v42, 6 }
 0x277   :  { %v868_v48 = vmul.f32 %v2114_v41, %v2081_v17  ;;  %1674 = vpow2.f32 %v1580_v36  ;;  %v860_v61 = vsel %vm2138_vm7, %v2075_v12, %v856_v47  ;;  %vm873_vm9 = vweird.f32 %v2114_v41 }
 0x278   :  { %1676 = vrcp.f32 %v2120_v43  ;;  %v2163_v12 = vsel %vm2129_vm6, %v864_v51, %v860_v61  ;;  %vm2183_vm12 = vmor %vm872_vm10, %vm873_vm9  ;;  %vm887_vm14 = vweird.f32 %v2120_v43  ;;  %v891_v31 = vand.u32 2147483647, %v2120_v43 }
 0x279   :  { %v869_v52 = vsub.f32 1.0, %v868_v48  ;;  %v1309_v30 = vrot.slane %v2163_v12, 4  ;;  %v893_v32 = vand.u32 2147483648, %v2120_v43  ;;  %vm1073_vm15 = vcmask 1044484  }
 0x27a   :  { %v720_v55 = vpop.f32.mrf.mxu3  ;;  %v1138_v35 = vrot.slane %v2163_v12, 7  ;;  %v1104_v37 = vrot.slane %v2163_v12, 6  ;;  %v1241_v38 = vrot.slane %v2163_v12, 2  ;;  %v1275_v39 = vrot.slane %v2163_v12, 3 }
 0x27b   :  { %v870_v63 = vmul.f32 %v2114_v41, %v869_v52  ;;  %v721_v0 = vadd.f32 %v2048_v23, %v720_v55  ;;  %v1207_v47 = vrot.slane %v2163_v12, 1  ;;  %v1065_v48 = vsel %vm1064_vm13, %v1063_v60, %v2077_v14 }
 0x27c   :  { %v1173_v51 = vsel %vm1070_vm8, %v2163_v12, %v1172_v26  ;;  %vm2222_vm5 = vcmp.eq.f32.partialorder %v891_v31, 8.507059e+37  ;;  %v894_v53 = vor.u32 1.1754944e-38, %v893_v32  ;;  %v1139_v14 = vsel %vm1070_vm8, %v1138_v35, %v1137_v21 }
 0x27d   :  { %v1675_v6 = vpop.eup %1674  ;;  %v1581_v7 = vmul.f32 -1.442695, %v721_v0  ;;  %v871_v19 = vadd.f32 %v2114_v41, %v870_v63  ;;  %v1105_v55 = vsel %vm1070_vm8, %v1104_v37, %v1103_v40  ;;  %v1242_v60 = vsel %vm1070_vm8, %v1241_v38, %v1240_v45 }
 0x27e   :  { %v2159_v11 = vpop.eup %1676  ;;  %v2165_v15 = vadd.f32 1.0, %v1675_v6  ;;  %v2239_v61 = vsel %vm1070_vm8, %v1275_v39, %v1274_v62  ;;  %v2242_v63 = vsel %vm1070_vm8, %v1207_v47, %v1206_v13  ;;  %vm1076_vm10 = vcmask 1045509  }
 0x27f   :  { %v883_v24 = vmul.f32 %v2159_v11, %v2120_v43  ;;  %1678 = vpow2.f32 %v1581_v7  ;;  %v875_v27 = vsel %vm2183_vm12, %v2114_v41, %v871_v19  ;;  %v1310_v41 = vsel %vm1070_vm8, %v1309_v30, %v1308_v10 }
 0x280   :  { %1680 = vrcp.f32 %v2165_v15  ;;  %v2209_v42 = vsel %vm2174_vm11, %v879_v22, %v875_v27  ;;  %vm888_vm4 = vweird.f32 %v2159_v11  ;;  %vm902_vm7 = vweird.f32 %v2165_v15 }
 0x281   :  { %v884_v25 = vsub.f32 1.0, %v883_v24  ;;  %v1311_v57 = vrot.slane %v2209_v42, 3  ;;  %vm2232_vm6 = vmor %vm887_vm14, %vm888_vm4  ;;  %v906_v1 = vand.u32 2147483647, %v2165_v15  ;;  %v908_v3 = vand.u32 2147483648, %v2165_v15 }
 0x282   :  { %v723_v17 = vpop.f32.mrf.mxu3  ;;  %v1174_v4 = vrot.slane %v2209_v42, 7  ;;  %v1140_v7 = vrot.slane %v2209_v42, 6  ;;  %v1243_v16 = vrot.slane %v2209_v42, 1  ;;  %v1068_v18 = vsel %vm1067_vm3, %v1066_v29, %v1065_v48 }
 0x283   :  { %v885_v28 = vmul.f32 %v2159_v11, %v884_v25  ;;  %v724_v33 = vadd.f32 %v2048_v23, %v723_v17  ;;  %v1312_v8 = vsel %vm1073_vm15, %v1311_v57, %v1310_v41  ;;  %vm2269_vm12 = vcmp.eq.f32.partialorder %v906_v1, 8.507059e+37 }
 0x284   :  { %v1069_v21 = vrot.slane %v2163_v12, 5  ;;  %v909_v25 = vor.u32 1.1754944e-38, %v908_v3  ;;  %v1277_v26 = vrot.slane %v2209_v42, 2  ;;  %vm1079_vm14 = vcmask 1046534  }
 0x285   :  { %v1679_v36 = vpop.eup %1678  ;;  %v886_v49 = vadd.f32 %v2159_v11, %v885_v28  ;;  %v1582_v54 = vmul.f32 -1.442695, %v724_v33  ;;  %v1175_v34 = vsel %vm1073_vm15, %v1174_v4, %v1173_v51  ;;  %v1141_v17 = vsel %vm1073_vm15, %v1140_v7, %v1139_v14 }
 0x286   :  { %v2205_v44 = vpop.eup %1680  ;;  %v2211_v46 = vadd.f32 1.0, %v1679_v36  ;;  %v2287_v27 = vsel %vm1073_vm15, %v1243_v16, %v1242_v60  ;;  %v1278_v7 = vsel %vm1073_vm15, %v1277_v26, %v2239_v61 }
 0x287   :  { %v898_v50 = vmul.f32 %v2205_v44, %v2165_v15  ;;  %v890_v0 = vsel %vm2232_vm6, %v2159_v11, %v886_v49  ;;  %vm903_vm9 = vweird.f32 %v2205_v44  ;;  %v1106_v11 = vrot.slane %v2209_v42, 5 }
 0x288   :  { %1682 = vrcp.f32 %v2211_v46  ;;  %v2258_v10 = vsel %vm2222_vm5, %v894_v53, %v890_v0  ;;  %vm2265_vm11 = vmor %vm902_vm7, %vm903_vm9  ;;  %v921_v15 = vand.u32 2147483647, %v2211_v46  ;;  %vm917_vm4 = vweird.f32 %v2211_v46 }
 0x289   :  { %v899_v56 = vsub.f32 1.0, %v898_v50  ;;  %1684 = vpow2.f32 %v1582_v54  ;;  %v1313_v40 = vrot.slane %v2258_v10, 2  ;;  %v923_v12 = vand.u32 2147483648, %v2211_v46 }
 0x28a   :  { %v725_v59 = vpop.f32.mrf.mxu3  ;;  %vm1082_vm5 = vcmask 1047559   ;;  %v1107_v13 = vsel %vm1073_vm15, %v1106_v11, %v1105_v55  ;;  %vm2294_vm7 = vcmp.eq.f32.partialorder %v921_v15, 8.507059e+37  ;;  %v1176_v33 = vrot.slane %v2258_v10, 6 }
 0x28b   :  { %v900_v43 = vmul.f32 %v2205_v44, %v899_v56  ;;  %v726_v2 = vadd.f32 %v2048_v23, %v725_v59  ;;  %v1142_v35 = vrot.slane %v2258_v10, 5  ;;  %v1108_v36 = vrot.slane %v2258_v10, 4 }
 0x28c   :  { %v924_v47 = vor.u32 1.1754944e-38, %v923_v12  ;;  %v1071_v50 = vsel %vm1070_vm8, %v1069_v21, %v1068_v18  ;;  %v1072_v56 = vrot.slane %v2209_v42, 4  ;;  %v1279_v16 = vrot.slane %v2258_v10, 1 }
 0x28d   :  { %v901_v5 = vadd.f32 %v2205_v44, %v900_v43  ;;  %v1583_v6 = vmul.f32 -1.442695, %v726_v2  ;;  %v1143_v60 = vsel %vm1076_vm10, %v1142_v35, %v1141_v17  ;;  %v1109_v0 = vsel %vm1076_vm10, %v1108_v36, %v1107_v13 }
 0x28e   :  { %v1683_v9 = vpop.eup %1682  ;;  %v1210_v18 = vrot.slane %v2258_v10, 7 }
 0x28f   :  { %v913_v20 = vmul.f32 %v1683_v9, %v2211_v46  ;;  %1686 = vpow2.f32 %v1583_v6  ;;  %v905_v22 = vsel %vm2265_vm11, %v2205_v44, %v901_v5  ;;  %v1685_v45 = vpop.eup %1684  ;;  %vm918_vm6 = vweird.f32 %v1683_v9 }
 0x290   :  { %v2291_v28 = vsel %vm2269_vm12, %v909_v25, %v905_v22  ;;  %v2301_v39 = vadd.f32 1.0, %v1685_v45  ;;  %v1314_v44 = vsel %vm1076_vm10, %v1313_v40, %v1312_v8  ;;  %vm919_vm9 = vmor %vm917_vm4, %vm918_vm6  ;;  %v1177_v46 = vsel %vm1076_vm10, %v1176_v33, %v1175_v34 }
 0x291   :  { %v914_v30 = vsub.f32 1.0, %v913_v20  ;;  %v1178_v49 = vrot.slane %v2291_v28, 5  ;;  %v1144_v52 = vrot.slane %v2291_v28, 4  ;;  %v1110_v53 = vrot.slane %v2291_v28, 3 }
 0x292   :  { %v728_v62 = vpop.f32.mrf.mxu3  ;;  %v1315_v57 = vrot.slane %v2291_v28, 1  ;;  %v1209_v8 = vsel %vm1073_vm15, %v2209_v42, %v2242_v63  ;;  %v1246_v42 = vrot.slane %v2291_v28, 7  ;;  %v1074_v20 = vsel %vm1073_vm15, %v1072_v56, %v1071_v50 }
 0x293   :  { %v915_v29 = vmul.f32 %v1683_v9, %v914_v30  ;;  %v729_v31 = vadd.f32 %v2048_v23, %v728_v62  ;;  %v1179_v59 = vsel %vm1079_vm14, %v1178_v49, %v1177_v46  ;;  %v1145_v3 = vsel %vm1079_vm14, %v1144_v52, %v1143_v60 }
 0x294   :  { %v1111_v4 = vsel %vm1079_vm14, %v1110_v53, %v1109_v0  ;;  %v1316_v19 = vsel %vm1079_vm14, %v1315_v57, %v1314_v44  ;;  %v1212_v15 = vrot.slane %v2291_v28, 6  ;;  %v1075_v34 = vrot.slane %v2258_v10, 3 }
 0x295   :  { %v1687_v37 = vpop.eup %1686  ;;  %v916_v38 = vadd.f32 %v1683_v9, %v915_v29  ;;  %v1584_v41 = vmul.f32 -1.442695, %v729_v31  ;;  %v1245_v40 = vsel %vm1076_vm10, %v2258_v10, %v2287_v27  ;;  %v1280_v45 = vsel %vm1076_vm10, %v1279_v16, %v1278_v7 }
 0x296   :  { %v2306_v48 = vadd.f32 1.0, %v1687_v37  ;;  %v1078_v12 = vrot.slane %v2291_v28, 2  ;;  %v1247_v29 = vsel %vm1079_vm14, %v1246_v42, %v1245_v40  ;;  %v1211_v31 = vsel %vm1076_vm10, %v1210_v18, %v1209_v8 }
 0x297   :  { %v920_v51 = vsel %vm919_vm9, %v1683_v9, %v916_v38  ;;  %1688 = vpow2.f32 %v1584_v41  ;;  %v1281_v10 = vsel %vm1079_vm14, %v2291_v28, %v1280_v45  ;;  %v1213_v27 = vsel %vm1079_vm14, %v1212_v15, %v1211_v31 }
 0x298   :  { %v2314_v54 = vsel %vm2294_vm7, %v924_v47, %v920_v51  ;;  %1690 = vrcp.f32 %v2306_v48  ;;  %v1077_v41 = vsel %vm1076_vm10, %v1075_v34, %v1074_v20  ;;  %v953_v46 = vand.u32 2147483648, %v2306_v48 }
 0x299   :  { %1692 = vrcp.f32 %v2301_v39  ;;  %v1180_v14 = vrot.slane %v2314_v54, 4  ;;  %v1146_v55 = vrot.slane %v2314_v54, 3  ;;  %v1112_v43 = vrot.slane %v2314_v54, 2 }
 0x29a   :  { %v730_v58 = vpop.f32.mrf.mxu3  ;;  %v2351_v63 = vsel %vm1082_vm5, %v2314_v54, %v1316_v19  ;;  %v1248_v25 = vrot.slane %v2314_v54, 6  ;;  %v1282_v26 = vrot.slane %v2314_v54, 7  ;;  %v1214_v30 = vrot.slane %v2314_v54, 5 }
 0x29b   :  { %v731_v1 = vadd.f32 %v2048_v23, %v730_v58  ;;  %v1181_v2 = vsel %vm1082_vm5, %v1180_v14, %v1179_v59  ;;  %v1147_v5 = vsel %vm1082_vm5, %v1146_v55, %v1145_v3  ;;  %v1113_v6 = vsel %vm1082_vm5, %v1112_v43, %v1111_v4 }
 0x29c   :  { %1196 = vrot.lane.b32.xlu2 %v1181_v2, %s1716_s6  ;;  %1162 = vrot.lane.b32.xlu1 %v1147_v5, %s1717_s25  ;;  %v1081_v32 = vrot.slane %v2314_v54, 1  ;;  %v1249_v35 = vsel %vm1082_vm5, %v1248_v25, %v1247_v29  ;;  %v1283_v37 = vsel %vm1082_vm5, %v1282_v26, %v1281_v10  ;;  %v1215_v38 = vsel %vm1082_vm5, %v1214_v30, %v1213_v27 }
 0x29d   :  { %v1689_v9 = vpop.eup %1688  ;;  %v1585_v11 = vmul.f32 -1.442695, %v731_v1  ;;  %1128 = vrot.lane.b32.xlu0 %v1113_v6, %s1718_s1  ;;  %v1080_v28 = vsel %vm1079_vm14, %v1078_v12, %v1077_v41  ;;  %vm947_vm12 = vweird.f32 %v2306_v48  ;;  %v951_v55 = vand.u32 2147483647, %v2306_v48 }
 0x29e   :  { %v2344_v24 = vpop.eup %1690  ;;  %v2346_v61 = vadd.f32 1.0, %v1689_v9  ;;  %v2390_v52 = vsel %vm1082_vm5, %v1081_v32, %v1080_v28  ;;  %vm932_vm6 = vweird.f32 %v2301_v39  ;;  %v954_v43 = vor.u32 1.1754944e-38, %v953_v46 }
 0x29f   :  { %v2354_v21 = vpop.eup %1692  ;;  %v943_v22 = vmul.f32 %v2344_v24, %v2306_v48  ;;  %1694 = vpow2.f32 %v1585_v11  ;;  %vm948_vm11 = vweird.f32 %v2344_v24  ;;  %vm952_vm9 = vcmp.eq.f32.partialorder %v951_v55, 8.507059e+37 }
 0x2a0   :  { %1696 = vrcp.f32 %v2346_v61  ;;  %v928_v62 = vmul.f32 %v2354_v21, %v2301_v39  ;;  %vm949_vm4 = vmor %vm947_vm12, %vm948_vm11  ;;  %vm933_vm7 = vweird.f32 %v2354_v21  ;;  %v938_v48 = vand.u32 2147483648, %v2301_v39 }
 0x2a1   :  { %v944_v17 = vsub.f32 1.0, %v943_v22  ;;  %v936_v7 = vand.u32 2147483647, %v2301_v39  ;;  %vm2415_vm12 = vmor %vm932_vm6, %vm933_vm7  ;;  %v968_v11 = vand.u32 2147483648, %v2346_v61  ;;  %v966_v19 = vand.u32 2147483647, %v2346_v61 }
 0x2a2   :  { %v733_v13 = vpop.f32.mrf.mxu3  ;;  %v929_v50 = vsub.f32 1.0, %v928_v62  ;;  %v939_v20 = vor.u32 1.1754944e-38, %v938_v48 }
 0x2a3   :  { %v734_v33 = vadd.f32 %v2048_v23, %v733_v13  ;;  %v945_v36 = vmul.f32 %v2344_v24, %v944_v17  ;;  %vm937_vm6 = vcmp.eq.f32.partialorder %v936_v7, 8.507059e+37  ;;  %v969_v30 = vor.u32 1.1754944e-38, %v968_v11 }
 0x2a4   :  { %1264 = vrot.lane.b32.xlu2 %v1249_v35, %s1719_s26  ;;  %1298 = vrot.lane.b32.xlu1 %v1283_v37, %s1720_s27  ;;  %v930_v14 = vmul.f32 %v2354_v21, %v929_v50  ;;  %vm967_vm7 = vcmp.eq.f32.partialorder %v966_v19, 8.507059e+37 }
 0x2a5   :  { %v1695_v44 = vpop.eup %1694  ;;  %v1586_v47 = vmul.f32 -1.442695, %v734_v33  ;;  %1230 = vrot.lane.b32.xlu0 %v1215_v38, %s1721_s28  ;;  %v946_v54 = vadd.f32 %v2344_v24, %v945_v36 }
 0x2a6   :  { %v1697_v49 = vpop.eup %1696  ;;  %v2387_v51 = vadd.f32 1.0, %v1695_v44  ;;  %v931_v3 = vadd.f32 %v2354_v21, %v930_v14 }
 0x2a7   :  { %v958_v53 = vmul.f32 %v1697_v49, %v2346_v61  ;;  %1698 = vpow2.f32 %v1586_v47  ;;  %v950_v59 = vsel %vm949_vm4, %v2344_v24, %v946_v54  ;;  %vm963_vm11 = vweird.f32 %v1697_v49 }
 0x2a8   :  { %1700 = vrcp.f32 %v2387_v51  ;;  %v2408_v5 = vsel %vm952_vm9, %v954_v43, %v950_v59  ;;  %v935_v18 = vsel %vm2415_vm12, %v2354_v21, %v931_v3  ;;  %vm962_vm4 = vweird.f32 %v2346_v61 }
 0x2a9   :  { %v959_v56 = vsub.f32 1.0, %v958_v53  ;;  %v1084_v42 = vrot.slane %v2408_v5, 7  ;;  %vm964_vm9 = vmor %vm962_vm4, %vm963_vm11  ;;  %v2427_v26 = vsel %vm937_vm6, %v939_v20, %v935_v18  ;;  %v983_v62 = vand.u32 2147483648, %v2387_v51 }
 0x2aa   :  { %v735_v57 = vpop.f32.mrf.mxu3  ;;  %vm977_vm11 = vweird.f32 %v2387_v51  ;;  %v981_v13 = vand.u32 2147483647, %v2387_v51  ;;  %v1182_v46 = vrot.slane %v2427_v26, 3  ;;  %v1114_v14 = vrot.slane %v2427_v26, 1 }
 0x2ab   :  { %v736_v58 = vadd.f32 %v2048_v23, %v735_v57  ;;  %v960_v60 = vmul.f32 %v1697_v49, %v959_v56  ;;  %v1085_v61 = vsel %vm1064_vm13, %v1084_v42, %v2427_v26  ;;  %v984_v27 = vor.u32 1.1754944e-38, %v983_v62 }
 0x2ac   :  { %v1148_v56 = vrot.slane %v2427_v26, 2  ;;  %v1284_v55 = vrot.slane %v2427_v26, 6  ;;  %v1183_v59 = vrot.slane %v2408_v5, 2  ;;  %v1149_v43 = vrot.slane %v2408_v5, 1 }
 0x2ad   :  { %v1699_v0 = vpop.eup %1698  ;;  %v1587_v1 = vmul.f32 -1.442695, %v736_v58  ;;  %v961_v8 = vadd.f32 %v1697_v49, %v960_v60  ;;  %v1285_v9 = vrot.slane %v2408_v5, 5  ;;  %v1217_v11 = vrot.slane %v2408_v5, 3 }
 0x2ae   :  { %v1701_v2 = vpop.eup %1700  ;;  %v2405_v4 = vadd.f32 1.0, %v1699_v0  ;;  %v1216_v19 = vrot.slane %v2427_v26, 4  ;;  %v1115_v20 = vsel %vm1064_vm13, %v2408_v5, %v1114_v14 }
 0x2af   :  { %v973_v6 = vmul.f32 %v1701_v2, %v2387_v51  ;;  %1702 = vpow2.f32 %v1587_v1  ;;  %v965_v25 = vsel %vm964_vm9, %v1697_v49, %v961_v8  ;;  %vm978_vm12 = vweird.f32 %v1701_v2 }
 0x2b0   :  { %1704 = vrcp.f32 %v2405_v4  ;;  %v2433_v40 = vsel %vm967_vm7, %v969_v30, %v965_v25  ;;  %vm979_vm4 = vmor %vm977_vm11, %vm978_vm12  ;;  %vm982_vm9 = vcmp.eq.f32.partialorder %v981_v13, 8.507059e+37  ;;  %v996_v50 = vand.u32 2147483647, %v2405_v4 }
 0x2b1   :  { %v974_v16 = vsub.f32 1.0, %v973_v6  ;;  %v1086_v32 = vrot.slane %v2433_v40, 6  ;;  %vm992_vm7 = vweird.f32 %v2405_v4  ;;  %v1184_v25 = vsel %vm1064_vm13, %v1183_v59, %v1182_v46 }
 0x2b2   :  { %v738_v24 = vpop.f32.mrf.mxu3 }
 0x2b3   :  { %v975_v39 = vmul.f32 %v1701_v2, %v974_v16  ;;  %v739_v22 = vadd.f32 %v2048_v23, %v738_v24  ;;  %v1087_v47 = vsel %vm1067_vm3, %v1086_v32, %v1085_v61  ;;  %v1250_v24 = vrot.slane %v2427_v26, 5 }
 0x2b5   :  { %v1703_v15 = vpop.eup %1702  ;;  %v1588_v34 = vmul.f32 -1.442695, %v739_v22  ;;  %v976_v45 = vadd.f32 %v1701_v2, %v975_v39  ;;  %v1318_v39 = vrot.slane %v2427_v26, 7 }
 0x2b6   :  { %v1705_v21 = vpop.eup %1704  ;;  %v2429_v17 = vadd.f32 1.0, %v1703_v15 }
 0x2b7   :  { %v988_v12 = vmul.f32 %v1705_v21, %v2405_v4  ;;  %1706 = vpow2.f32 %v1588_v34  ;;  %v980_v33 = vsel %vm979_vm4, %v1701_v2, %v976_v45  ;;  %vm993_vm6 = vweird.f32 %v1705_v21 }
 0x2b8   :  { %1708 = vrcp.f32 %v2429_v17  ;;  %v2442_v41 = vsel %vm982_vm9, %v984_v27, %v980_v33  ;;  %vm2453_vm12 = vmor %vm992_vm7, %vm993_vm6  ;;  %vm997_vm4 = vcmp.eq.f32.partialorder %v996_v50, 8.507059e+37  ;;  %v1013_v0 = vand.u32 2147483648, %v2429_v17 }
 0x2b9   :  { %v989_v29 = vsub.f32 1.0, %v988_v12  ;;  %v1088_v53 = vrot.slane %v2442_v41, 5  ;;  %vm1007_vm9 = vweird.f32 %v2429_v17  ;;  %v1011_v3 = vand.u32 2147483647, %v2429_v17 }
 0x2ba   :  { %v740_v31 = vpop.f32.mrf.mxu3  ;;  %v1014_v42 = vor.u32 1.1754944e-38, %v1013_v0  ;;  %v1150_v34 = vsel %vm1064_vm13, %v1149_v43, %v1148_v56  ;;  %v1185_v12 = vrot.slane %v2433_v40, 1  ;;  %v1152_v27 = vrot.slane %v2442_v41, 7 }
 0x2bb   :  { %v990_v35 = vmul.f32 %v1705_v21, %v989_v29  ;;  %v741_v10 = vadd.f32 %v2048_v23, %v740_v31  ;;  %v998_v23 = vand.u32 2147483648, %v2405_v4  ;;  %v1089_v4 = vsel %vm1070_vm8, %v1088_v53, %v1087_v47 }
 0x2bc   :  { %vm1012_vm7 = vcmp.eq.f32.partialorder %v1011_v3, 8.507059e+37  ;;  %v1151_v13 = vsel %vm1067_vm3, %v2433_v40, %v1150_v34  ;;  %v1116_v29 = vrot.slane %v2433_v40, 7  ;;  %v1251_v31 = vrot.slane %v2408_v5, 4 }
 0x2bd   :  { %v1707_v36 = vpop.eup %1706  ;;  %v1589_v37 = vmul.f32 -1.442695, %v741_v10  ;;  %v991_v28 = vadd.f32 %v1705_v21, %v990_v35  ;;  %v999_v60 = vor.u32 1.1754944e-38, %v998_v23  ;;  %v1253_v23 = vrot.slane %v2433_v40, 3 }
 0x2be   :  { %v1709_v38 = vpop.eup %1708  ;;  %v2444_v44 = vadd.f32 1.0, %v1707_v36  ;;  %v1118_v36 = vrot.slane %v2442_v41, 6  ;;  %v1117_v50 = vsel %vm1067_vm3, %v1116_v29, %v1115_v20 }
 0x2bf   :  { %v1003_v49 = vmul.f32 %v1709_v38, %v2429_v17  ;;  %1710 = vpow2.f32 %v1589_v37  ;;  %v995_v57 = vsel %vm2453_vm12, %v1705_v21, %v991_v28  ;;  %vm1008_vm11 = vweird.f32 %v1709_v38 }
 0x2c0   :  { %1712 = vrcp.f32 %v2444_v44  ;;  %v2469_v6 = vsel %vm997_vm4, %v999_v60, %v995_v57  ;;  %vm2471_vm6 = vmor %vm1007_vm9, %vm1008_vm11  ;;  %v2494_v21 = vsel %vm1064_vm13, %v1285_v9, %v1284_v55  ;;  %v2497_v17 = vsel %vm1064_vm13, %v1217_v11, %v1216_v19 }
 0x2c1   :  { %v1004_v51 = vsub.f32 1.0, %v1003_v49  ;;  %v1090_v15 = vrot.slane %v2469_v6, 4  ;;  %v1028_v45 = vand.u32 2147483648, %v2444_v44  ;;  %v1026_v62 = vand.u32 2147483647, %v2444_v44 }
 0x2c2   :  { %vm1022_vm11 = vweird.f32 %v2444_v44  ;;  %v1287_v37 = vrot.slane %v2433_v40, 4  ;;  %v1188_v14 = vrot.slane %v2469_v6, 7  ;;  %v1153_v55 = vsel %vm1070_vm8, %v1152_v27, %v1151_v13 }
 0x2c3   :  { %v1005_v58 = vmul.f32 %v1709_v38, %v1004_v51  ;;  %v1091_v33 = vsel %vm1073_vm15, %v1090_v15, %v1089_v4  ;;  %v1029_v28 = vor.u32 1.1754944e-38, %v1028_v45  ;;  %vm1027_vm9 = vcmp.eq.f32.partialorder %v1026_v62, 8.507059e+37 }
 0x2c4   :  { %v1119_v57 = vsel %vm1070_vm8, %v1118_v36, %v1117_v50  ;;  %v1154_v0 = vrot.slane %v2469_v6, 6  ;;  %v1221_v27 = vrot.slane %v2442_v41, 1  ;;  %v1291_v36 = vrot.slane %v2469_v6, 2 }
 0x2c5   :  { %v1711_v1 = vpop.eup %1710  ;;  %v1006_v2 = vadd.f32 %v1709_v38, %v1005_v58  ;;  %v1289_v58 = vrot.slane %v2442_v41, 3 }
 0x2c6   :  { %v1713_v48 = vpop.eup %1712  ;;  %v2475_v8 = vadd.f32 1.0, %v1711_v1  ;;  %v1155_v20 = vsel %vm1073_vm15, %v1154_v0, %v1153_v55  ;;  %v1319_v0 = vrot.slane %v2408_v5, 6 }
 0x2c7   :  { %v1010_v16 = vsel %vm2471_vm6, %v1709_v38, %v1006_v2  ;;  %v1018_v18 = vmul.f32 %v1713_v48, %v2444_v44  ;;  %vm1023_vm12 = vweird.f32 %v1713_v48  ;;  %v1219_v38 = vrot.slane %v2433_v40, 2 }
 0x2c8   :  { %1714 = vrcp.f32 %v2475_v8  ;;  %v2490_v30 = vsel %vm1012_vm7, %v1014_v42, %v1010_v16  ;;  %vm1024_vm4 = vmor %vm1022_vm11, %vm1023_vm12  ;;  %v1186_v44 = vsel %vm1067_vm3, %v1185_v12, %v1184_v25  ;;  %v1043_v46 = vand.u32 2147483648, %v2475_v8 }
 0x2c9   :  { %v1019_v22 = vsub.f32 1.0, %v1018_v18  ;;  %v1092_v35 = vrot.slane %v2490_v30, 3  ;;  %v1187_v56 = vsel %vm1070_vm8, %v2442_v41, %v1186_v44  ;;  %v1041_v60 = vand.u32 2147483647, %v2475_v8 }
 0x2ca   :  { %v1190_v43 = vrot.slane %v2490_v30, 6  ;;  %v1156_v1 = vrot.slane %v2490_v30, 5  ;;  %v1120_v2 = vrot.slane %v2469_v6, 5  ;;  %vm1037_vm7 = vweird.f32 %v2475_v8 }
 0x2cb   :  { %v1020_v61 = vmul.f32 %v1713_v48, %v1019_v22  ;;  %v1093_v51 = vsel %vm1076_vm10, %v1092_v35, %v1091_v33  ;;  %v1122_v7 = vrot.slane %v2490_v30, 4  ;;  %vm1042_vm11 = vcmp.eq.f32.partialorder %v1041_v60, 8.507059e+37 }
 0x2cc   :  { %v1189_v42 = vsel %vm1073_vm15, %v1188_v14, %v1187_v56  ;;  %v1157_v25 = vsel %vm1076_vm10, %v1156_v1, %v1155_v20  ;;  %v1121_v15 = vsel %vm1073_vm15, %v1120_v2, %v1119_v57  ;;  %v1288_v44 = vsel %vm1067_vm3, %v1287_v37, %v2494_v21 }
 0x2cd   :  { %v1021_v32 = vadd.f32 %v1713_v48, %v1020_v61  ;;  %v1123_v45 = vsel %vm1076_vm10, %v1122_v7, %v1121_v15  ;;  %v1293_v50 = vrot.slane %v2490_v30, 1 }
 0x2ce   :  { %v1715_v10 = vpop.eup %1714 }
 0x2cf   :  { %v1025_v47 = vsel %vm1024_vm4, %v1713_v48, %v1021_v32  ;;  %v1033_v49 = vmul.f32 %v1715_v10, %v2475_v8  ;;  %vm1038_vm6 = vweird.f32 %v1715_v10  ;;  %v1044_v48 = vor.u32 1.1754944e-38, %v1043_v46 }
 0x2d0   :  { %v2518_v53 = vsel %vm1027_vm9, %v1029_v28, %v1025_v47  ;;  %vm1039_vm12 = vmor %vm1037_vm7, %vm1038_vm6  ;;  %v1191_v8 = vsel %vm1076_vm10, %v1190_v43, %v1189_v42  ;;  %v1252_v47 = vsel %vm1064_vm13, %v1251_v31, %v1250_v24  ;;  %v1255_v28 = vrot.slane %v2442_v41, 2 }
 0x2d1   :  { %v1034_v54 = vsub.f32 1.0, %v1033_v49  ;;  %v1094_v3 = vrot.slane %v2518_v53, 2  ;;  %v1192_v9 = vrot.slane %v2518_v53, 5  ;;  %v1158_v11 = vrot.slane %v2518_v53, 4 }
 0x2d2   :  { %v1124_v16 = vrot.slane %v2518_v53, 3  ;;  %v1290_v46 = vsel %vm1070_vm8, %v1289_v58, %v1288_v44  ;;  %v1220_v24 = vsel %vm1067_vm3, %v1219_v38, %v2497_v17  ;;  %v1226_v31 = vrot.slane %v2518_v53, 6 }
 0x2d3   :  { %v1035_v59 = vmul.f32 %v1715_v10, %v1034_v54  ;;  %v1095_v18 = vsel %vm1079_vm14, %v1094_v3, %v1093_v51  ;;  %v1193_v62 = vsel %vm1079_vm14, %v1192_v9, %v1191_v8  ;;  %v1159_v13 = vsel %vm1079_vm14, %v1158_v11, %v1157_v25 }
 0x2d4   :  { %v1125_v29 = vsel %vm1079_vm14, %v1124_v16, %v1123_v45  ;;  %v1224_v51 = vrot.slane %v2490_v30, 7  ;;  %v1257_v54 = vrot.slane %v2469_v6, 1  ;;  %v1254_v56 = vsel %vm1067_vm3, %v1253_v23, %v1252_v47 }
 0x2d5   :  { %v1036_v4 = vadd.f32 %v1715_v10, %v1035_v59  ;;  %v1222_v21 = vsel %vm1070_vm8, %v1221_v27, %v1220_v24  ;;  %v1260_v55 = vrot.slane %v2518_v53, 7  ;;  %v1292_v57 = vsel %vm1073_vm15, %v1291_v36, %v1290_v46 }
 0x2d6   :  { %v1223_v58 = vsel %vm1073_vm15, %v2469_v6, %v1222_v21  ;;  %v1256_v59 = vsel %vm1070_vm8, %v1255_v28, %v1254_v56  ;;  %v1294_v38 = vsel %vm1076_vm10, %v1293_v50, %v1292_v57  ;;  %v1321_v3 = vrot.slane %v2433_v40, 5 }
 0x2d7   :  { %v1040_v19 = vsel %vm1039_vm12, %v1715_v10, %v1036_v4  ;;  %v1225_v23 = vsel %vm1076_vm10, %v1224_v51, %v1223_v58  ;;  %v1258_v60 = vsel %vm1073_vm15, %v1257_v54, %v1256_v59  ;;  %v1295_v43 = vsel %vm1079_vm14, %v2518_v53, %v1294_v38 }
 0x2d8   :  { %v2541_v22 = vsel %vm1042_vm11, %v1044_v48, %v1040_v19  ;;  %v1227_v1 = vsel %vm1079_vm14, %v1226_v31, %v1225_v23  ;;  %v1259_v2 = vsel %vm1076_vm10, %v2490_v30, %v1258_v60  ;;  %v1323_v9 = vrot.slane %v2442_v41, 4 }
 0x2d9   :  { %v1194_v34 = vrot.slane %v2541_v22, 4  ;;  %v1160_v61 = vrot.slane %v2541_v22, 3  ;;  %v1126_v12 = vrot.slane %v2541_v22, 2  ;;  %v1096_v32 = vrot.slane %v2541_v22, 1 }
 0x2da   :  { %v1296_v14 = vrot.slane %v2541_v22, 7  ;;  %v1228_v37 = vrot.slane %v2541_v22, 5  ;;  %v1262_v17 = vrot.slane %v2541_v22, 6  ;;  %v1261_v7 = vsel %vm1079_vm14, %v1260_v55, %v1259_v2 }
 0x2db   :  { %v1195_v33 = vsel %vm1082_vm5, %v1194_v34, %v1193_v62  ;;  %v1161_v35 = vsel %vm1082_vm5, %v1160_v61, %v1159_v13  ;;  %v1127_v10 = vsel %vm1082_vm5, %v1126_v12, %v1125_v29  ;;  %v1097_v49 = vsel %vm1082_vm5, %v1096_v32, %v1095_v18 }
 0x2dc   :  { %1198 = vrot.lane.b32.xlu2 %v1195_v33, %s1716_s6  ;;  %1164 = vrot.lane.b32.xlu1 %v1161_v35, %s1717_s25  ;;  %v1297_v4 = vsel %vm1082_vm5, %v1296_v14, %v1295_v43  ;;  %v1229_v48 = vsel %vm1082_vm5, %v1228_v37, %v1227_v1  ;;  %v1263_v5 = vsel %vm1082_vm5, %v1262_v17, %v1261_v7  ;;  %v1325_v11 = vrot.slane %v2469_v6, 3 }
 0x2dd   :  { %1130 = vrot.lane.b32.xlu0 %v1127_v10, %s1718_s1  ;;  %v1320_v40 = vsel %vm1064_vm13, %v1319_v0, %v1318_v39  ;;  %v1327_v16 = vrot.slane %v2490_v30, 2  ;;  %v1329_v41 = vrot.slane %v2518_v53, 1  ;;  %vm1342_vm13 = vcmask 392192  }
 0x2de   :  { %v1322_v18 = vsel %vm1067_vm3, %v1321_v3, %v1320_v40  ;;  %vm1347_vm3 = vcmask 654336  }
 0x2df   :  { %v1324_v19 = vsel %vm1070_vm8, %v1323_v9, %v1322_v18  ;;  %vm1350_vm8 = vcmask 785408  }
 0x2e0   :  { %v1326_v42 = vsel %vm1073_vm15, %v1325_v11, %v1324_v19  ;;  %vm1353_vm15 = vcmask 916480  }
 0x2e1   :  { %v1328_v20 = vsel %vm1076_vm10, %v1327_v16, %v1326_v42 }
 0x2e2   :  { %v1330_v6 = vsel %vm1079_vm14, %v1329_v41, %v1328_v20 }
 0x2e3   :  { %v1331_v8 = vsel %vm1082_vm5, %v2541_v22, %v1330_v6 }
 0x2e4   :  { %1300 = vrot.lane.b32.xlu2 %v1297_v4, %s1720_s27  ;;  %1232 = vrot.lane.b32.xlu1 %v1229_v48, %s1721_s28 }
 0x2e5   :  { %1266 = vrot.lane.b32.xlu0 %v1263_v5, %s1719_s26 }
 0x2ec   :  { %1334 = vrot.lane.b32.xlu1 %v1331_v8, %s1722_s29 }
 0x2ed   :  { %1332 = vrot.lane.b32.xlu0 %v2351_v63, %s1722_s29 }
 0x2f6   :  { %v1197_v30 = vpop.permute.xlu2 %1196 }
 0x2fe   :  { %v1265_v15 = vpop.permute.xlu2 %1264 }
 0x30e   :  { %v1163_v26 = vpop.permute.xlu1 %1162 }
 0x30f   :  { %v1129_v39 = vpop.permute.xlu0 %1128 }
 0x310   :  { %v1338_v12 = vsel %vm535_vm1, %v2390_v52, %v1129_v39 }
 0x311   :  { %v1340_v13 = vsel %vm327_vm0, %v1338_v12, %v1163_v26 }
 0x312   :  { %v1343_v33 = vsel %vm1342_vm13, %v1340_v13, %v1197_v30 }
 0x316   :  { %v1299_v25 = vpop.permute.xlu1 %1298 }
 0x317   :  { %v1231_v53 = vpop.permute.xlu0 %1230 }
 0x318   :  { %v1345_v10 = vsel %vm669_vm2, %v1343_v33, %v1231_v53 }
 0x319   :  { %v1348_v36 = vsel %vm1347_vm3, %v1345_v10, %v1265_v15 }
 0x31a   :  { %v1351_v50 = vsel %vm1350_vm8, %v1348_v36, %v1299_v25 }
 0x336   :  { %v1199_v62 = vpop.permute.xlu2 %1198 }
 0x33e   :  { %v1301_v52 = vpop.permute.xlu2 %1300 }
 0x34e   :  { %v1165_v34 = vpop.permute.xlu1 %1164 }
 0x34f   :  { %v1131_v61 = vpop.permute.xlu0 %1130 }
 0x350   :  { %v1339_v45 = vsel %vm535_vm1, %v1097_v49, %v1131_v61 }
 0x351   :  { %v1341_v22 = vsel %vm327_vm0, %v1339_v45, %v1165_v34 }
 0x352   :  { %v1344_v29 = vsel %vm1342_vm13, %v1341_v22, %v1199_v62 }
 0x356   :  { %v1233_v63 = vpop.permute.xlu1 %1232 }
 0x357   :  { %v1267_v32 = vpop.permute.xlu0 %1266  ;;  %v1346_v35 = vsel %vm669_vm2, %v1344_v29, %v1233_v63 }
 0x358   :  { %v1349_v27 = vsel %vm1347_vm3, %v1346_v35, %v1267_v32 }
 0x359   :  { %v1352_v28 = vsel %vm1350_vm8, %v1349_v27, %v1301_v52 }
 0x35e   :  { %v1335_v47 = vpop.permute.xlu1 %1334 }
 0x35f   :  { %v1355_v49 = vsel %vm1353_vm15, %v1352_v28, %v1335_v47  ;;  %v1333_v44 = vpop.permute.xlu0 %1332 }
 0x360   :  { %1357 = vst [vmem:[%s2644_s7 + $0x8] sm:$0xff] %v1355_v49  ;;  %v1354_v51 = vsel %vm1353_vm15, %v1351_v50, %v1333_v44 }
 0x361   :  { %1356 = vst [vmem:[%s2644_s7] sm:$0xff] %v1354_v51 }

</bundles_post_ra>
